<compile_context>
chip_gen: v6e
topology: v6e:2x2x1
jax: 0.10.0
libtpu: 0.0.40
codegen_flags: <defaults>
</compile_context>

<pallas_src>
import jax
import jax.numpy as jnp
import numpy as np
from jax import lax
from jax.experimental import pallas as pl
from jax.experimental.pallas import tpu as pltpu


def mixed3a(x, conv_w, bn_scale, bn_shift):
    """MaxPool3d(3, s=2) || (Conv3d(64->96, 3, s=2, bias=False) + BN + ReLU), concat."""
    N, C, D, H, W = x.shape
    Cout = conv_w.shape[0]
    k = conv_w.shape[2]                  # 3
    st = 2                               # stride
    Cp = 128                             # lane-dense padded Cout
    Ctot = C + Cout                      # 160 output channels (pool | conv)

    Do = (D - k) // st + 1
    Ho = (H - k) // st + 1
    Wo = (W - k) // st + 1
    Hh, Ww = Ho + 1, Wo + 1              # coarse (stride-2) H/W extents actually needed
    Hp, Wp = 2 * Hh, 2 * Ww              # padded H/W so the parity split is rectangular
    R = Hh * Ww                          # flattened coarse-HW rows per parity plane
    Rp = ((R + 1 + 7) // 8) * 8          # +1 slack row for the (1,1)-offset taps, pad to 8

    # --- single layout pass over x: NCDHW -> (N*D, 4 parities, Rp, C), channel-last ---
    xc = jnp.transpose(x, (0, 2, 3, 4, 1))                                   # (N,D,H,W,C)
    xc = jnp.pad(xc, ((0, 0), (0, 0), (0, Hp - H), (0, Wp - W), (0, 0)))
    xs = xc.reshape(N, D, Hh, 2, Ww, 2, C).transpose(0, 1, 3, 5, 2, 4, 6)    # (N,D,py,px,Hh,Ww,C)
    xs = xs.reshape(N * D, 4, R, C)
    xs = jnp.pad(xs, ((0, 0), (0, 0), (0, Rp - R), (0, 0)))

    # --- fold BN scale into the conv weights, pad Cout -> 128 (lane-dense matmul N) ---
    wt = jnp.transpose(conv_w, (2, 3, 4, 1, 0)).reshape(k * k * k, C, Cout)  # t = (dz*3+dy)*3+dx
    wt = (wt * bn_scale.reshape(1, 1, Cout)).astype(jnp.float32)
    wt = jnp.pad(wt, ((0, 0), (0, 0), (0, Cp - Cout)))
    bt = jnp.pad(bn_shift.astype(jnp.float32), (0, Cp - Cout)).reshape(1, Cp)

    M = Ho * Ww  # matmul M / output rows per (n, do) step (contains a junk wo==Wo column)

    def kernel(s0_ref, s1_ref, s2_ref, w_ref, b_ref, o_ref):
        # sX_ref: (4, Rp, C)   parity-decimated input slab at depth 2*do + X
        # w_ref : (27, C, 128) scale-folded conv weights, Cout padded
        # b_ref : (1, 128)     folded BN shift
        # o_ref : (M, 160)     [:, :64] maxpool | [:, 64:] conv+BN+ReLU
        slabs = (s0_ref, s1_ref, s2_ref)
        acc = jnp.zeros((M, Cp), jnp.float32)
        pool = None
        for dz in range(k):
            s_ref = slabs[dz]
            for dy in range(k):
                for dx in range(k):
                    ph = (dy % 2) * 2 + (dx % 2)          # H/W parity plane
                    r0 = (dy // 2) * Ww + (dx // 2)       # coarse-row offset (0,1,Ww,Ww+1)
                    tap = s_ref[ph, r0:r0 + M, :]         # (M, C) contiguous slice
                    pool = tap if pool is None else jnp.maximum(pool, tap)
                    t = (dz * k + dy) * k + dx
                    acc = acc + jnp.dot(tap, w_ref[t],
                                        preferred_element_type=jnp.float32)
        conv = jnp.maximum(acc + b_ref[...], 0.0)[:, :Cout]      # drop Cout padding
        o_ref[...] = jnp.concatenate([pool, conv], axis=-1).astype(o_ref.dtype)

    def slab_spec(dz):
        return pl.BlockSpec(
            (None, 4, Rp, C),
            lambda n, do, dz=dz: (n * D + st * do + dz, 0, 0, 0))

    out = pl.pallas_call(
        kernel,
        out_shape=jax.ShapeDtypeStruct((N, Do, M, Ctot), jnp.float32),
        grid=(N, Do),
        in_specs=[
            slab_spec(0), slab_spec(1), slab_spec(2),
            pl.BlockSpec((k * k * k, C, Cp), lambda n, do: (0, 0, 0)),
            pl.BlockSpec((1, Cp), lambda n, do: (0, 0)),
        ],
        out_specs=pl.BlockSpec((None, None, M, Ctot), lambda n, do: (n, do, 0, 0)),
        compiler_params=pltpu.CompilerParams(
            dimension_semantics=("parallel", "parallel")),
    )(xs, xs, xs, wt, bt)

    # Drop the junk wo == Wo column and restore NCDHW (single fused XLA pass).
    out = out.reshape(N, Do, Ho, Ww, Ctot)[:, :, :, :Wo, :]
    return jnp.transpose(out, (0, 4, 1, 2, 3))


if __name__ == "__main__":
    key = jax.random.PRNGKey(0)
    kx, kw, kg, kb, km, kv = jax.random.split(key, 6)

    Cin, Cout, ksz = 64, 96, 3
    eps = 1e-3

    # Small input; Cin must be 64 per the module definition.
    x = jax.random.normal(kx, (2, Cin, 9, 9, 9), dtype=jnp.float32)

    # Conv weight (Cout, Cin, 3, 3, 3), bias=False.
    conv_w = jax.random.normal(kw, (Cout, Cin, ksz, ksz, ksz), dtype=jnp.float32)
    conv_w = conv_w * jnp.float32(np.sqrt(2.0 / (Cin * ksz ** 3)))

    # BatchNorm3d params / running stats (inference-mode), folded to scale/shift.
    gamma = jax.random.uniform(kg, (Cout,), jnp.float32, 0.5, 1.5)
    beta = 0.1 * jax.random.normal(kb, (Cout,), jnp.float32)
    run_mean = 0.1 * jax.random.normal(km, (Cout,), jnp.float32)
    run_var = jax.random.uniform(kv, (Cout,), jnp.float32, 0.5, 1.5)
    bn_scale = gamma / jnp.sqrt(run_var + eps)
    bn_shift = beta - run_mean * bn_scale

    out = jax.jit(mixed3a)(x, conv_w, bn_scale, bn_shift)
    out = jax.block_until_ready(out)

    # Pure-JAX reference.
    ref_pool = lax.reduce_window(
        x, -jnp.inf, lax.max, (1, 1, 3, 3, 3), (1, 1, 2, 2, 2), "VALID")
    ref_conv = lax.conv_general_dilated(
        x, conv_w, (2, 2, 2), "VALID",
        dimension_numbers=("NCDHW", "OIDHW", "NCDHW"))
    ref_conv = jnp.maximum(
        ref_conv * bn_scale.reshape(1, -1, 1, 1, 1)
        + bn_shift.reshape(1, -1, 1, 1, 1), 0.0)
    ref = jnp.concatenate([ref_pool, ref_conv], axis=1)

    np.testing.assert_allclose(np.asarray(out), np.asarray(ref),
                               rtol=1e-4, atol=1e-4)
    assert out.shape == (2, 160, 4, 4, 4), out.shape
    print("KERNEL_OK")
</pallas_src>

<mosaic_0001>
module attributes {stable_mosaic.version = 11 : i64} {
  func.func @kernel(%arg0: i32, %arg1: i32, %arg2: memref<1x4x32x64xf32, #tpu.memory_space<vmem>>, %arg3: memref<1x4x32x64xf32, #tpu.memory_space<vmem>>, %arg4: memref<1x4x32x64xf32, #tpu.memory_space<vmem>>, %arg5: memref<27x64x128xf32, #tpu.memory_space<vmem>>, %arg6: memref<1x128xf32, #tpu.memory_space<vmem>>, %arg7: memref<1x1x20x160xf32, #tpu.memory_space<vmem>>) attributes {dimension_semantics = [#tpu.dimension_semantics<parallel>, #tpu.dimension_semantics<parallel>], iteration_bounds = array<i64: 2, 4>, scalar_prefetch = 0 : i64, scratch_operands = 0 : i64, tpu.core_type = #tpu.core_type<tc>, window_params = [{transform_indices = @transform_0, window_bounds = array<i64: 1, 4, 32, 64>}, {transform_indices = @transform_1, window_bounds = array<i64: 1, 4, 32, 64>}, {transform_indices = @transform_2, window_bounds = array<i64: 1, 4, 32, 64>}, {pipeline_mode = #tpu.pipeline_mode<synchronous>, transform_indices = @transform_3, window_bounds = array<i64: 27, 64, 128>}, {pipeline_mode = #tpu.pipeline_mode<synchronous>, transform_indices = @transform_4, window_bounds = array<i64: 1, 128>}, {transform_indices = @transform_5, window_bounds = array<i64: 1, 1, 20, 160>}]} {
    %cst = arith.constant 0.000000e+00 : f32
    %0 = vector.broadcast %cst : f32 to vector<20x128xf32>
    %c0 = arith.constant 0 : index
    %c0_0 = arith.constant 0 : index
    %c0_1 = arith.constant 0 : index
    %c0_2 = arith.constant 0 : index
    %1 = vector.load %arg2[%c0, %c0_0, %c0_1, %c0_2] : memref<1x4x32x64xf32, #tpu.memory_space<vmem>>, vector<1x1x20x64xf32>
    %2 = vector.shape_cast %1 : vector<1x1x20x64xf32> to vector<20x64xf32>
    %c0_3 = arith.constant 0 : index
    %c0_4 = arith.constant 0 : index
    %c0_5 = arith.constant 0 : index
    %3 = vector.load %arg5[%c0_3, %c0_4, %c0_5] : memref<27x64x128xf32, #tpu.memory_space<vmem>>, vector<1x64x128xf32>
    %4 = vector.shape_cast %3 : vector<1x64x128xf32> to vector<64x128xf32>
    %cst_6 = arith.constant dense<0.000000e+00> : vector<20x128xf32>
    %5 = tpu.matmul %2, %4, %cst_6 {dimension_numbers = #tpu.dot_dimension_numbers<[1], [0], [0], [1], [0, 0, 1, 1], [], []>} : vector<20x64xf32>, vector<64x128xf32>, vector<20x128xf32> -> vector<20x128xf32>
    %6 = arith.addf %0, %5 : vector<20x128xf32>
    %c0_7 = arith.constant 0 : index
    %c1 = arith.constant 1 : index
    %c0_8 = arith.constant 0 : index
    %c0_9 = arith.constant 0 : index
    %7 = vector.load %arg2[%c0_7, %c1, %c0_8, %c0_9] : memref<1x4x32x64xf32, #tpu.memory_space<vmem>>, vector<1x1x20x64xf32>
    %8 = vector.shape_cast %7 : vector<1x1x20x64xf32> to vector<20x64xf32>
    %9 = arith.maximumf %2, %8 : vector<20x64xf32>
    %c1_10 = arith.constant 1 : index
    %c0_11 = arith.constant 0 : index
    %c0_12 = arith.constant 0 : index
    %10 = vector.load %arg5[%c1_10, %c0_11, %c0_12] : memref<27x64x128xf32, #tpu.memory_space<vmem>>, vector<1x64x128xf32>
    %11 = vector.shape_cast %10 : vector<1x64x128xf32> to vector<64x128xf32>
    %cst_13 = arith.constant dense<0.000000e+00> : vector<20x128xf32>
    %12 = tpu.matmul %8, %11, %cst_13 {dimension_numbers = #tpu.dot_dimension_numbers<[1], [0], [0], [1], [0, 0, 1, 1], [], []>} : vector<20x64xf32>, vector<64x128xf32>, vector<20x128xf32> -> vector<20x128xf32>
    %13 = arith.addf %6, %12 : vector<20x128xf32>
    %c0_14 = arith.constant 0 : index
    %c0_15 = arith.constant 0 : index
    %c1_16 = arith.constant 1 : index
    %c0_17 = arith.constant 0 : index
    %14 = vector.load %arg2[%c0_14, %c0_15, %c1_16, %c0_17] : memref<1x4x32x64xf32, #tpu.memory_space<vmem>>, vector<1x1x20x64xf32>
    %15 = vector.shape_cast %14 : vector<1x1x20x64xf32> to vector<20x64xf32>
    %16 = arith.maximumf %9, %15 : vector<20x64xf32>
    %c2 = arith.constant 2 : index
    %c0_18 = arith.constant 0 : index
    %c0_19 = arith.constant 0 : index
    %17 = vector.load %arg5[%c2, %c0_18, %c0_19] : memref<27x64x128xf32, #tpu.memory_space<vmem>>, vector<1x64x128xf32>
    %18 = vector.shape_cast %17 : vector<1x64x128xf32> to vector<64x128xf32>
    %cst_20 = arith.constant dense<0.000000e+00> : vector<20x128xf32>
    %19 = tpu.matmul %15, %18, %cst_20 {dimension_numbers = #tpu.dot_dimension_numbers<[1], [0], [0], [1], [0, 0, 1, 1], [], []>} : vector<20x64xf32>, vector<64x128xf32>, vector<20x128xf32> -> vector<20x128xf32>
    %20 = arith.addf %13, %19 : vector<20x128xf32>
    %c0_21 = arith.constant 0 : index
    %c2_22 = arith.constant 2 : index
    %c0_23 = arith.constant 0 : index
    %c0_24 = arith.constant 0 : index
    %21 = vector.load %arg2[%c0_21, %c2_22, %c0_23, %c0_24] : memref<1x4x32x64xf32, #tpu.memory_space<vmem>>, vector<1x1x20x64xf32>
    %22 = vector.shape_cast %21 : vector<1x1x20x64xf32> to vector<20x64xf32>
    %23 = arith.maximumf %16, %22 : vector<20x64xf32>
    %c3 = arith.constant 3 : index
    %c0_25 = arith.constant 0 : index
    %c0_26 = arith.constant 0 : index
    %24 = vector.load %arg5[%c3, %c0_25, %c0_26] : memref<27x64x128xf32, #tpu.memory_space<vmem>>, vector<1x64x128xf32>
    %25 = vector.shape_cast %24 : vector<1x64x128xf32> to vector<64x128xf32>
    %cst_27 = arith.constant dense<0.000000e+00> : vector<20x128xf32>
    %26 = tpu.matmul %22, %25, %cst_27 {dimension_numbers = #tpu.dot_dimension_numbers<[1], [0], [0], [1], [0, 0, 1, 1], [], []>} : vector<20x64xf32>, vector<64x128xf32>, vector<20x128xf32> -> vector<20x128xf32>
    %27 = arith.addf %20, %26 : vector<20x128xf32>
    %c0_28 = arith.constant 0 : index
    %c3_29 = arith.constant 3 : index
    %c0_30 = arith.constant 0 : index
    %c0_31 = arith.constant 0 : index
    %28 = vector.load %arg2[%c0_28, %c3_29, %c0_30, %c0_31] : memref<1x4x32x64xf32, #tpu.memory_space<vmem>>, vector<1x1x20x64xf32>
    %29 = vector.shape_cast %28 : vector<1x1x20x64xf32> to vector<20x64xf32>
    %30 = arith.maximumf %23, %29 : vector<20x64xf32>
    %c4 = arith.constant 4 : index
    %c0_32 = arith.constant 0 : index
    %c0_33 = arith.constant 0 : index
    %31 = vector.load %arg5[%c4, %c0_32, %c0_33] : memref<27x64x128xf32, #tpu.memory_space<vmem>>, vector<1x64x128xf32>
    %32 = vector.shape_cast %31 : vector<1x64x128xf32> to vector<64x128xf32>
    %cst_34 = arith.constant dense<0.000000e+00> : vector<20x128xf32>
    %33 = tpu.matmul %29, %32, %cst_34 {dimension_numbers = #tpu.dot_dimension_numbers<[1], [0], [0], [1], [0, 0, 1, 1], [], []>} : vector<20x64xf32>, vector<64x128xf32>, vector<20x128xf32> -> vector<20x128xf32>
    %34 = arith.addf %27, %33 : vector<20x128xf32>
    %c0_35 = arith.constant 0 : index
    %c2_36 = arith.constant 2 : index
    %c1_37 = arith.constant 1 : index
    %c0_38 = arith.constant 0 : index
    %35 = vector.load %arg2[%c0_35, %c2_36, %c1_37, %c0_38] : memref<1x4x32x64xf32, #tpu.memory_space<vmem>>, vector<1x1x20x64xf32>
    %36 = vector.shape_cast %35 : vector<1x1x20x64xf32> to vector<20x64xf32>
    %37 = arith.maximumf %30, %36 : vector<20x64xf32>
    %c5 = arith.constant 5 : index
    %c0_39 = arith.constant 0 : index
    %c0_40 = arith.constant 0 : index
    %38 = vector.load %arg5[%c5, %c0_39, %c0_40] : memref<27x64x128xf32, #tpu.memory_space<vmem>>, vector<1x64x128xf32>
    %39 = vector.shape_cast %38 : vector<1x64x128xf32> to vector<64x128xf32>
    %cst_41 = arith.constant dense<0.000000e+00> : vector<20x128xf32>
    %40 = tpu.matmul %36, %39, %cst_41 {dimension_numbers = #tpu.dot_dimension_numbers<[1], [0], [0], [1], [0, 0, 1, 1], [], []>} : vector<20x64xf32>, vector<64x128xf32>, vector<20x128xf32> -> vector<20x128xf32>
    %41 = arith.addf %34, %40 : vector<20x128xf32>
    %c0_42 = arith.constant 0 : index
    %c0_43 = arith.constant 0 : index
    %c5_44 = arith.constant 5 : index
    %c0_45 = arith.constant 0 : index
    %42 = vector.load %arg2[%c0_42, %c0_43, %c5_44, %c0_45] : memref<1x4x32x64xf32, #tpu.memory_space<vmem>>, vector<1x1x20x64xf32>
    %43 = vector.shape_cast %42 : vector<1x1x20x64xf32> to vector<20x64xf32>
    %44 = arith.maximumf %37, %43 : vector<20x64xf32>
    %c6 = arith.constant 6 : index
    %c0_46 = arith.constant 0 : index
    %c0_47 = arith.constant 0 : index
    %45 = vector.load %arg5[%c6, %c0_46, %c0_47] : memref<27x64x128xf32, #tpu.memory_space<vmem>>, vector<1x64x128xf32>
    %46 = vector.shape_cast %45 : vector<1x64x128xf32> to vector<64x128xf32>
    %cst_48 = arith.constant dense<0.000000e+00> : vector<20x128xf32>
    %47 = tpu.matmul %43, %46, %cst_48 {dimension_numbers = #tpu.dot_dimension_numbers<[1], [0], [0], [1], [0, 0, 1, 1], [], []>} : vector<20x64xf32>, vector<64x128xf32>, vector<20x128xf32> -> vector<20x128xf32>
    %48 = arith.addf %41, %47 : vector<20x128xf32>
    %c0_49 = arith.constant 0 : index
    %c1_50 = arith.constant 1 : index
    %c5_51 = arith.constant 5 : index
    %c0_52 = arith.constant 0 : index
    %49 = vector.load %arg2[%c0_49, %c1_50, %c5_51, %c0_52] : memref<1x4x32x64xf32, #tpu.memory_space<vmem>>, vector<1x1x20x64xf32>
    %50 = vector.shape_cast %49 : vector<1x1x20x64xf32> to vector<20x64xf32>
    %51 = arith.maximumf %44, %50 : vector<20x64xf32>
    %c7 = arith.constant 7 : index
    %c0_53 = arith.constant 0 : index
    %c0_54 = arith.constant 0 : index
    %52 = vector.load %arg5[%c7, %c0_53, %c0_54] : memref<27x64x128xf32, #tpu.memory_space<vmem>>, vector<1x64x128xf32>
    %53 = vector.shape_cast %52 : vector<1x64x128xf32> to vector<64x128xf32>
    %cst_55 = arith.constant dense<0.000000e+00> : vector<20x128xf32>
    %54 = tpu.matmul %50, %53, %cst_55 {dimension_numbers = #tpu.dot_dimension_numbers<[1], [0], [0], [1], [0, 0, 1, 1], [], []>} : vector<20x64xf32>, vector<64x128xf32>, vector<20x128xf32> -> vector<20x128xf32>
    %55 = arith.addf %48, %54 : vector<20x128xf32>
    %c0_56 = arith.constant 0 : index
    %c0_57 = arith.constant 0 : index
    %c6_58 = arith.constant 6 : index
    %c0_59 = arith.constant 0 : index
    %56 = vector.load %arg2[%c0_56, %c0_57, %c6_58, %c0_59] : memref<1x4x32x64xf32, #tpu.memory_space<vmem>>, vector<1x1x20x64xf32>
    %57 = vector.shape_cast %56 : vector<1x1x20x64xf32> to vector<20x64xf32>
    %58 = arith.maximumf %51, %57 : vector<20x64xf32>
    %c8 = arith.constant 8 : index
    %c0_60 = arith.constant 0 : index
    %c0_61 = arith.constant 0 : index
    %59 = vector.load %arg5[%c8, %c0_60, %c0_61] : memref<27x64x128xf32, #tpu.memory_space<vmem>>, vector<1x64x128xf32>
    %60 = vector.shape_cast %59 : vector<1x64x128xf32> to vector<64x128xf32>
    %cst_62 = arith.constant dense<0.000000e+00> : vector<20x128xf32>
    %61 = tpu.matmul %57, %60, %cst_62 {dimension_numbers = #tpu.dot_dimension_numbers<[1], [0], [0], [1], [0, 0, 1, 1], [], []>} : vector<20x64xf32>, vector<64x128xf32>, vector<20x128xf32> -> vector<20x128xf32>
    %62 = arith.addf %55, %61 : vector<20x128xf32>
    %c0_63 = arith.constant 0 : index
    %c0_64 = arith.constant 0 : index
    %c0_65 = arith.constant 0 : index
    %c0_66 = arith.constant 0 : index
    %63 = vector.load %arg3[%c0_63, %c0_64, %c0_65, %c0_66] : memref<1x4x32x64xf32, #tpu.memory_space<vmem>>, vector<1x1x20x64xf32>
    %64 = vector.shape_cast %63 : vector<1x1x20x64xf32> to vector<20x64xf32>
    %65 = arith.maximumf %58, %64 : vector<20x64xf32>
    %c9 = arith.constant 9 : index
    %c0_67 = arith.constant 0 : index
    %c0_68 = arith.constant 0 : index
    %66 = vector.load %arg5[%c9, %c0_67, %c0_68] : memref<27x64x128xf32, #tpu.memory_space<vmem>>, vector<1x64x128xf32>
    %67 = vector.shape_cast %66 : vector<1x64x128xf32> to vector<64x128xf32>
    %cst_69 = arith.constant dense<0.000000e+00> : vector<20x128xf32>
    %68 = tpu.matmul %64, %67, %cst_69 {dimension_numbers = #tpu.dot_dimension_numbers<[1], [0], [0], [1], [0, 0, 1, 1], [], []>} : vector<20x64xf32>, vector<64x128xf32>, vector<20x128xf32> -> vector<20x128xf32>
    %69 = arith.addf %62, %68 : vector<20x128xf32>
    %c0_70 = arith.constant 0 : index
    %c1_71 = arith.constant 1 : index
    %c0_72 = arith.constant 0 : index
    %c0_73 = arith.constant 0 : index
    %70 = vector.load %arg3[%c0_70, %c1_71, %c0_72, %c0_73] : memref<1x4x32x64xf32, #tpu.memory_space<vmem>>, vector<1x1x20x64xf32>
    %71 = vector.shape_cast %70 : vector<1x1x20x64xf32> to vector<20x64xf32>
    %72 = arith.maximumf %65, %71 : vector<20x64xf32>
    %c10 = arith.constant 10 : index
    %c0_74 = arith.constant 0 : index
    %c0_75 = arith.constant 0 : index
    %73 = vector.load %arg5[%c10, %c0_74, %c0_75] : memref<27x64x128xf32, #tpu.memory_space<vmem>>, vector<1x64x128xf32>
    %74 = vector.shape_cast %73 : vector<1x64x128xf32> to vector<64x128xf32>
    %cst_76 = arith.constant dense<0.000000e+00> : vector<20x128xf32>
    %75 = tpu.matmul %71, %74, %cst_76 {dimension_numbers = #tpu.dot_dimension_numbers<[1], [0], [0], [1], [0, 0, 1, 1], [], []>} : vector<20x64xf32>, vector<64x128xf32>, vector<20x128xf32> -> vector<20x128xf32>
    %76 = arith.addf %69, %75 : vector<20x128xf32>
    %c0_77 = arith.constant 0 : index
    %c0_78 = arith.constant 0 : index
    %c1_79 = arith.constant 1 : index
    %c0_80 = arith.constant 0 : index
    %77 = vector.load %arg3[%c0_77, %c0_78, %c1_79, %c0_80] : memref<1x4x32x64xf32, #tpu.memory_space<vmem>>, vector<1x1x20x64xf32>
    %78 = vector.shape_cast %77 : vector<1x1x20x64xf32> to vector<20x64xf32>
    %79 = arith.maximumf %72, %78 : vector<20x64xf32>
    %c11 = arith.constant 11 : index
    %c0_81 = arith.constant 0 : index
    %c0_82 = arith.constant 0 : index
    %80 = vector.load %arg5[%c11, %c0_81, %c0_82] : memref<27x64x128xf32, #tpu.memory_space<vmem>>, vector<1x64x128xf32>
    %81 = vector.shape_cast %80 : vector<1x64x128xf32> to vector<64x128xf32>
    %cst_83 = arith.constant dense<0.000000e+00> : vector<20x128xf32>
    %82 = tpu.matmul %78, %81, %cst_83 {dimension_numbers = #tpu.dot_dimension_numbers<[1], [0], [0], [1], [0, 0, 1, 1], [], []>} : vector<20x64xf32>, vector<64x128xf32>, vector<20x128xf32> -> vector<20x128xf32>
    %83 = arith.addf %76, %82 : vector<20x128xf32>
    %c0_84 = arith.constant 0 : index
    %c2_85 = arith.constant 2 : index
    %c0_86 = arith.constant 0 : index
    %c0_87 = arith.constant 0 : index
    %84 = vector.load %arg3[%c0_84, %c2_85, %c0_86, %c0_87] : memref<1x4x32x64xf32, #tpu.memory_space<vmem>>, vector<1x1x20x64xf32>
    %85 = vector.shape_cast %84 : vector<1x1x20x64xf32> to vector<20x64xf32>
    %86 = arith.maximumf %79, %85 : vector<20x64xf32>
    %c12 = arith.constant 12 : index
    %c0_88 = arith.constant 0 : index
    %c0_89 = arith.constant 0 : index
    %87 = vector.load %arg5[%c12, %c0_88, %c0_89] : memref<27x64x128xf32, #tpu.memory_space<vmem>>, vector<1x64x128xf32>
    %88 = vector.shape_cast %87 : vector<1x64x128xf32> to vector<64x128xf32>
    %cst_90 = arith.constant dense<0.000000e+00> : vector<20x128xf32>
    %89 = tpu.matmul %85, %88, %cst_90 {dimension_numbers = #tpu.dot_dimension_numbers<[1], [0], [0], [1], [0, 0, 1, 1], [], []>} : vector<20x64xf32>, vector<64x128xf32>, vector<20x128xf32> -> vector<20x128xf32>
    %90 = arith.addf %83, %89 : vector<20x128xf32>
    %c0_91 = arith.constant 0 : index
    %c3_92 = arith.constant 3 : index
    %c0_93 = arith.constant 0 : index
    %c0_94 = arith.constant 0 : index
    %91 = vector.load %arg3[%c0_91, %c3_92, %c0_93, %c0_94] : memref<1x4x32x64xf32, #tpu.memory_space<vmem>>, vector<1x1x20x64xf32>
    %92 = vector.shape_cast %91 : vector<1x1x20x64xf32> to vector<20x64xf32>
    %93 = arith.maximumf %86, %92 : vector<20x64xf32>
    %c13 = arith.constant 13 : index
    %c0_95 = arith.constant 0 : index
    %c0_96 = arith.constant 0 : index
    %94 = vector.load %arg5[%c13, %c0_95, %c0_96] : memref<27x64x128xf32, #tpu.memory_space<vmem>>, vector<1x64x128xf32>
    %95 = vector.shape_cast %94 : vector<1x64x128xf32> to vector<64x128xf32>
    %cst_97 = arith.constant dense<0.000000e+00> : vector<20x128xf32>
    %96 = tpu.matmul %92, %95, %cst_97 {dimension_numbers = #tpu.dot_dimension_numbers<[1], [0], [0], [1], [0, 0, 1, 1], [], []>} : vector<20x64xf32>, vector<64x128xf32>, vector<20x128xf32> -> vector<20x128xf32>
    %97 = arith.addf %90, %96 : vector<20x128xf32>
    %c0_98 = arith.constant 0 : index
    %c2_99 = arith.constant 2 : index
    %c1_100 = arith.constant 1 : index
    %c0_101 = arith.constant 0 : index
    %98 = vector.load %arg3[%c0_98, %c2_99, %c1_100, %c0_101] : memref<1x4x32x64xf32, #tpu.memory_space<vmem>>, vector<1x1x20x64xf32>
    %99 = vector.shape_cast %98 : vector<1x1x20x64xf32> to vector<20x64xf32>
    %100 = arith.maximumf %93, %99 : vector<20x64xf32>
    %c14 = arith.constant 14 : index
    %c0_102 = arith.constant 0 : index
    %c0_103 = arith.constant 0 : index
    %101 = vector.load %arg5[%c14, %c0_102, %c0_103] : memref<27x64x128xf32, #tpu.memory_space<vmem>>, vector<1x64x128xf32>
    %102 = vector.shape_cast %101 : vector<1x64x128xf32> to vector<64x128xf32>
    %cst_104 = arith.constant dense<0.000000e+00> : vector<20x128xf32>
    %103 = tpu.matmul %99, %102, %cst_104 {dimension_numbers = #tpu.dot_dimension_numbers<[1], [0], [0], [1], [0, 0, 1, 1], [], []>} : vector<20x64xf32>, vector<64x128xf32>, vector<20x128xf32> -> vector<20x128xf32>
    %104 = arith.addf %97, %103 : vector<20x128xf32>
    %c0_105 = arith.constant 0 : index
    %c0_106 = arith.constant 0 : index
    %c5_107 = arith.constant 5 : index
    %c0_108 = arith.constant 0 : index
    %105 = vector.load %arg3[%c0_105, %c0_106, %c5_107, %c0_108] : memref<1x4x32x64xf32, #tpu.memory_space<vmem>>, vector<1x1x20x64xf32>
    %106 = vector.shape_cast %105 : vector<1x1x20x64xf32> to vector<20x64xf32>
    %107 = arith.maximumf %100, %106 : vector<20x64xf32>
    %c15 = arith.constant 15 : index
    %c0_109 = arith.constant 0 : index
    %c0_110 = arith.constant 0 : index
    %108 = vector.load %arg5[%c15, %c0_109, %c0_110] : memref<27x64x128xf32, #tpu.memory_space<vmem>>, vector<1x64x128xf32>
    %109 = vector.shape_cast %108 : vector<1x64x128xf32> to vector<64x128xf32>
    %cst_111 = arith.constant dense<0.000000e+00> : vector<20x128xf32>
    %110 = tpu.matmul %106, %109, %cst_111 {dimension_numbers = #tpu.dot_dimension_numbers<[1], [0], [0], [1], [0, 0, 1, 1], [], []>} : vector<20x64xf32>, vector<64x128xf32>, vector<20x128xf32> -> vector<20x128xf32>
    %111 = arith.addf %104, %110 : vector<20x128xf32>
    %c0_112 = arith.constant 0 : index
    %c1_113 = arith.constant 1 : index
    %c5_114 = arith.constant 5 : index
    %c0_115 = arith.constant 0 : index
    %112 = vector.load %arg3[%c0_112, %c1_113, %c5_114, %c0_115] : memref<1x4x32x64xf32, #tpu.memory_space<vmem>>, vector<1x1x20x64xf32>
    %113 = vector.shape_cast %112 : vector<1x1x20x64xf32> to vector<20x64xf32>
    %114 = arith.maximumf %107, %113 : vector<20x64xf32>
    %c16 = arith.constant 16 : index
    %c0_116 = arith.constant 0 : index
    %c0_117 = arith.constant 0 : index
    %115 = vector.load %arg5[%c16, %c0_116, %c0_117] : memref<27x64x128xf32, #tpu.memory_space<vmem>>, vector<1x64x128xf32>
    %116 = vector.shape_cast %115 : vector<1x64x128xf32> to vector<64x128xf32>
    %cst_118 = arith.constant dense<0.000000e+00> : vector<20x128xf32>
    %117 = tpu.matmul %113, %116, %cst_118 {dimension_numbers = #tpu.dot_dimension_numbers<[1], [0], [0], [1], [0, 0, 1, 1], [], []>} : vector<20x64xf32>, vector<64x128xf32>, vector<20x128xf32> -> vector<20x128xf32>
    %118 = arith.addf %111, %117 : vector<20x128xf32>
    %c0_119 = arith.constant 0 : index
    %c0_120 = arith.constant 0 : index
    %c6_121 = arith.constant 6 : index
    %c0_122 = arith.constant 0 : index
    %119 = vector.load %arg3[%c0_119, %c0_120, %c6_121, %c0_122] : memref<1x4x32x64xf32, #tpu.memory_space<vmem>>, vector<1x1x20x64xf32>
    %120 = vector.shape_cast %119 : vector<1x1x20x64xf32> to vector<20x64xf32>
    %121 = arith.maximumf %114, %120 : vector<20x64xf32>
    %c17 = arith.constant 17 : index
    %c0_123 = arith.constant 0 : index
    %c0_124 = arith.constant 0 : index
    %122 = vector.load %arg5[%c17, %c0_123, %c0_124] : memref<27x64x128xf32, #tpu.memory_space<vmem>>, vector<1x64x128xf32>
    %123 = vector.shape_cast %122 : vector<1x64x128xf32> to vector<64x128xf32>
    %cst_125 = arith.constant dense<0.000000e+00> : vector<20x128xf32>
    %124 = tpu.matmul %120, %123, %cst_125 {dimension_numbers = #tpu.dot_dimension_numbers<[1], [0], [0], [1], [0, 0, 1, 1], [], []>} : vector<20x64xf32>, vector<64x128xf32>, vector<20x128xf32> -> vector<20x128xf32>
    %125 = arith.addf %118, %124 : vector<20x128xf32>
    %c0_126 = arith.constant 0 : index
    %c0_127 = arith.constant 0 : index
    %c0_128 = arith.constant 0 : index
    %c0_129 = arith.constant 0 : index
    %126 = vector.load %arg4[%c0_126, %c0_127, %c0_128, %c0_129] : memref<1x4x32x64xf32, #tpu.memory_space<vmem>>, vector<1x1x20x64xf32>
    %127 = vector.shape_cast %126 : vector<1x1x20x64xf32> to vector<20x64xf32>
    %128 = arith.maximumf %121, %127 : vector<20x64xf32>
    %c18 = arith.constant 18 : index
    %c0_130 = arith.constant 0 : index
    %c0_131 = arith.constant 0 : index
    %129 = vector.load %arg5[%c18, %c0_130, %c0_131] : memref<27x64x128xf32, #tpu.memory_space<vmem>>, vector<1x64x128xf32>
    %130 = vector.shape_cast %129 : vector<1x64x128xf32> to vector<64x128xf32>
    %cst_132 = arith.constant dense<0.000000e+00> : vector<20x128xf32>
    %131 = tpu.matmul %127, %130, %cst_132 {dimension_numbers = #tpu.dot_dimension_numbers<[1], [0], [0], [1], [0, 0, 1, 1], [], []>} : vector<20x64xf32>, vector<64x128xf32>, vector<20x128xf32> -> vector<20x128xf32>
    %132 = arith.addf %125, %131 : vector<20x128xf32>
    %c0_133 = arith.constant 0 : index
    %c1_134 = arith.constant 1 : index
    %c0_135 = arith.constant 0 : index
    %c0_136 = arith.constant 0 : index
    %133 = vector.load %arg4[%c0_133, %c1_134, %c0_135, %c0_136] : memref<1x4x32x64xf32, #tpu.memory_space<vmem>>, vector<1x1x20x64xf32>
    %134 = vector.shape_cast %133 : vector<1x1x20x64xf32> to vector<20x64xf32>
    %135 = arith.maximumf %128, %134 : vector<20x64xf32>
    %c19 = arith.constant 19 : index
    %c0_137 = arith.constant 0 : index
    %c0_138 = arith.constant 0 : index
    %136 = vector.load %arg5[%c19, %c0_137, %c0_138] : memref<27x64x128xf32, #tpu.memory_space<vmem>>, vector<1x64x128xf32>
    %137 = vector.shape_cast %136 : vector<1x64x128xf32> to vector<64x128xf32>
    %cst_139 = arith.constant dense<0.000000e+00> : vector<20x128xf32>
    %138 = tpu.matmul %134, %137, %cst_139 {dimension_numbers = #tpu.dot_dimension_numbers<[1], [0], [0], [1], [0, 0, 1, 1], [], []>} : vector<20x64xf32>, vector<64x128xf32>, vector<20x128xf32> -> vector<20x128xf32>
    %139 = arith.addf %132, %138 : vector<20x128xf32>
    %c0_140 = arith.constant 0 : index
    %c0_141 = arith.constant 0 : index
    %c1_142 = arith.constant 1 : index
    %c0_143 = arith.constant 0 : index
    %140 = vector.load %arg4[%c0_140, %c0_141, %c1_142, %c0_143] : memref<1x4x32x64xf32, #tpu.memory_space<vmem>>, vector<1x1x20x64xf32>
    %141 = vector.shape_cast %140 : vector<1x1x20x64xf32> to vector<20x64xf32>
    %142 = arith.maximumf %135, %141 : vector<20x64xf32>
    %c20 = arith.constant 20 : index
    %c0_144 = arith.constant 0 : index
    %c0_145 = arith.constant 0 : index
    %143 = vector.load %arg5[%c20, %c0_144, %c0_145] : memref<27x64x128xf32, #tpu.memory_space<vmem>>, vector<1x64x128xf32>
    %144 = vector.shape_cast %143 : vector<1x64x128xf32> to vector<64x128xf32>
    %cst_146 = arith.constant dense<0.000000e+00> : vector<20x128xf32>
    %145 = tpu.matmul %141, %144, %cst_146 {dimension_numbers = #tpu.dot_dimension_numbers<[1], [0], [0], [1], [0, 0, 1, 1], [], []>} : vector<20x64xf32>, vector<64x128xf32>, vector<20x128xf32> -> vector<20x128xf32>
    %146 = arith.addf %139, %145 : vector<20x128xf32>
    %c0_147 = arith.constant 0 : index
    %c2_148 = arith.constant 2 : index
    %c0_149 = arith.constant 0 : index
    %c0_150 = arith.constant 0 : index
    %147 = vector.load %arg4[%c0_147, %c2_148, %c0_149, %c0_150] : memref<1x4x32x64xf32, #tpu.memory_space<vmem>>, vector<1x1x20x64xf32>
    %148 = vector.shape_cast %147 : vector<1x1x20x64xf32> to vector<20x64xf32>
    %149 = arith.maximumf %142, %148 : vector<20x64xf32>
    %c21 = arith.constant 21 : index
    %c0_151 = arith.constant 0 : index
    %c0_152 = arith.constant 0 : index
    %150 = vector.load %arg5[%c21, %c0_151, %c0_152] : memref<27x64x128xf32, #tpu.memory_space<vmem>>, vector<1x64x128xf32>
    %151 = vector.shape_cast %150 : vector<1x64x128xf32> to vector<64x128xf32>
    %cst_153 = arith.constant dense<0.000000e+00> : vector<20x128xf32>
    %152 = tpu.matmul %148, %151, %cst_153 {dimension_numbers = #tpu.dot_dimension_numbers<[1], [0], [0], [1], [0, 0, 1, 1], [], []>} : vector<20x64xf32>, vector<64x128xf32>, vector<20x128xf32> -> vector<20x128xf32>
    %153 = arith.addf %146, %152 : vector<20x128xf32>
    %c0_154 = arith.constant 0 : index
    %c3_155 = arith.constant 3 : index
    %c0_156 = arith.constant 0 : index
    %c0_157 = arith.constant 0 : index
    %154 = vector.load %arg4[%c0_154, %c3_155, %c0_156, %c0_157] : memref<1x4x32x64xf32, #tpu.memory_space<vmem>>, vector<1x1x20x64xf32>
    %155 = vector.shape_cast %154 : vector<1x1x20x64xf32> to vector<20x64xf32>
    %156 = arith.maximumf %149, %155 : vector<20x64xf32>
    %c22 = arith.constant 22 : index
    %c0_158 = arith.constant 0 : index
    %c0_159 = arith.constant 0 : index
    %157 = vector.load %arg5[%c22, %c0_158, %c0_159] : memref<27x64x128xf32, #tpu.memory_space<vmem>>, vector<1x64x128xf32>
    %158 = vector.shape_cast %157 : vector<1x64x128xf32> to vector<64x128xf32>
    %cst_160 = arith.constant dense<0.000000e+00> : vector<20x128xf32>
    %159 = tpu.matmul %155, %158, %cst_160 {dimension_numbers = #tpu.dot_dimension_numbers<[1], [0], [0], [1], [0, 0, 1, 1], [], []>} : vector<20x64xf32>, vector<64x128xf32>, vector<20x128xf32> -> vector<20x128xf32>
    %160 = arith.addf %153, %159 : vector<20x128xf32>
    %c0_161 = arith.constant 0 : index
    %c2_162 = arith.constant 2 : index
    %c1_163 = arith.constant 1 : index
    %c0_164 = arith.constant 0 : index
    %161 = vector.load %arg4[%c0_161, %c2_162, %c1_163, %c0_164] : memref<1x4x32x64xf32, #tpu.memory_space<vmem>>, vector<1x1x20x64xf32>
    %162 = vector.shape_cast %161 : vector<1x1x20x64xf32> to vector<20x64xf32>
    %163 = arith.maximumf %156, %162 : vector<20x64xf32>
    %c23 = arith.constant 23 : index
    %c0_165 = arith.constant 0 : index
    %c0_166 = arith.constant 0 : index
    %164 = vector.load %arg5[%c23, %c0_165, %c0_166] : memref<27x64x128xf32, #tpu.memory_space<vmem>>, vector<1x64x128xf32>
    %165 = vector.shape_cast %164 : vector<1x64x128xf32> to vector<64x128xf32>
    %cst_167 = arith.constant dense<0.000000e+00> : vector<20x128xf32>
    %166 = tpu.matmul %162, %165, %cst_167 {dimension_numbers = #tpu.dot_dimension_numbers<[1], [0], [0], [1], [0, 0, 1, 1], [], []>} : vector<20x64xf32>, vector<64x128xf32>, vector<20x128xf32> -> vector<20x128xf32>
    %167 = arith.addf %160, %166 : vector<20x128xf32>
    %c0_168 = arith.constant 0 : index
    %c0_169 = arith.constant 0 : index
    %c5_170 = arith.constant 5 : index
    %c0_171 = arith.constant 0 : index
    %168 = vector.load %arg4[%c0_168, %c0_169, %c5_170, %c0_171] : memref<1x4x32x64xf32, #tpu.memory_space<vmem>>, vector<1x1x20x64xf32>
    %169 = vector.shape_cast %168 : vector<1x1x20x64xf32> to vector<20x64xf32>
    %170 = arith.maximumf %163, %169 : vector<20x64xf32>
    %c24 = arith.constant 24 : index
    %c0_172 = arith.constant 0 : index
    %c0_173 = arith.constant 0 : index
    %171 = vector.load %arg5[%c24, %c0_172, %c0_173] : memref<27x64x128xf32, #tpu.memory_space<vmem>>, vector<1x64x128xf32>
    %172 = vector.shape_cast %171 : vector<1x64x128xf32> to vector<64x128xf32>
    %cst_174 = arith.constant dense<0.000000e+00> : vector<20x128xf32>
    %173 = tpu.matmul %169, %172, %cst_174 {dimension_numbers = #tpu.dot_dimension_numbers<[1], [0], [0], [1], [0, 0, 1, 1], [], []>} : vector<20x64xf32>, vector<64x128xf32>, vector<20x128xf32> -> vector<20x128xf32>
    %174 = arith.addf %167, %173 : vector<20x128xf32>
    %c0_175 = arith.constant 0 : index
    %c1_176 = arith.constant 1 : index
    %c5_177 = arith.constant 5 : index
    %c0_178 = arith.constant 0 : index
    %175 = vector.load %arg4[%c0_175, %c1_176, %c5_177, %c0_178] : memref<1x4x32x64xf32, #tpu.memory_space<vmem>>, vector<1x1x20x64xf32>
    %176 = vector.shape_cast %175 : vector<1x1x20x64xf32> to vector<20x64xf32>
    %177 = arith.maximumf %170, %176 : vector<20x64xf32>
    %c25 = arith.constant 25 : index
    %c0_179 = arith.constant 0 : index
    %c0_180 = arith.constant 0 : index
    %178 = vector.load %arg5[%c25, %c0_179, %c0_180] : memref<27x64x128xf32, #tpu.memory_space<vmem>>, vector<1x64x128xf32>
    %179 = vector.shape_cast %178 : vector<1x64x128xf32> to vector<64x128xf32>
    %cst_181 = arith.constant dense<0.000000e+00> : vector<20x128xf32>
    %180 = tpu.matmul %176, %179, %cst_181 {dimension_numbers = #tpu.dot_dimension_numbers<[1], [0], [0], [1], [0, 0, 1, 1], [], []>} : vector<20x64xf32>, vector<64x128xf32>, vector<20x128xf32> -> vector<20x128xf32>
    %181 = arith.addf %174, %180 : vector<20x128xf32>
    %c0_182 = arith.constant 0 : index
    %c0_183 = arith.constant 0 : index
    %c6_184 = arith.constant 6 : index
    %c0_185 = arith.constant 0 : index
    %182 = vector.load %arg4[%c0_182, %c0_183, %c6_184, %c0_185] : memref<1x4x32x64xf32, #tpu.memory_space<vmem>>, vector<1x1x20x64xf32>
    %183 = vector.shape_cast %182 : vector<1x1x20x64xf32> to vector<20x64xf32>
    %184 = arith.maximumf %177, %183 : vector<20x64xf32>
    %c26 = arith.constant 26 : index
    %c0_186 = arith.constant 0 : index
    %c0_187 = arith.constant 0 : index
    %185 = vector.load %arg5[%c26, %c0_186, %c0_187] : memref<27x64x128xf32, #tpu.memory_space<vmem>>, vector<1x64x128xf32>
    %186 = vector.shape_cast %185 : vector<1x64x128xf32> to vector<64x128xf32>
    %cst_188 = arith.constant dense<0.000000e+00> : vector<20x128xf32>
    %187 = tpu.matmul %183, %186, %cst_188 {dimension_numbers = #tpu.dot_dimension_numbers<[1], [0], [0], [1], [0, 0, 1, 1], [], []>} : vector<20x64xf32>, vector<64x128xf32>, vector<20x128xf32> -> vector<20x128xf32>
    %188 = arith.addf %181, %187 : vector<20x128xf32>
    %c0_189 = arith.constant 0 : index
    %c0_190 = arith.constant 0 : index
    %189 = vector.load %arg6[%c0_189, %c0_190] : memref<1x128xf32, #tpu.memory_space<vmem>>, vector<1x128xf32>
    %190 = vector.broadcast %189 : vector<1x128xf32> to vector<20x128xf32>
    %191 = arith.addf %188, %190 : vector<20x128xf32>
    %cst_191 = arith.constant 0.000000e+00 : f32
    %192 = vector.broadcast %cst_191 : f32 to vector<20x128xf32>
    %193 = arith.maximumf %191, %192 : vector<20x128xf32>
    %194 = vector.extract_strided_slice %193 {offsets = [0, 0], sizes = [20, 96], strides = [1, 1]} : vector<20x128xf32> to vector<20x96xf32>
    %195 = tpu.concatenate %184, %194 in 1 : vector<20x64xf32>, vector<20x96xf32> -> vector<20x160xf32>
    %c0_192 = arith.constant 0 : index
    %c0_193 = arith.constant 0 : index
    %c0_194 = arith.constant 0 : index
    %c0_195 = arith.constant 0 : index
    %196 = vector.load %arg7[%c0_192, %c0_193, %c0_194, %c0_195] : memref<1x1x20x160xf32, #tpu.memory_space<vmem>>, vector<1x1x20x160xf32>
    %197 = vector.shape_cast %196 : vector<1x1x20x160xf32> to vector<20x160xf32>
    %198 = vector.shape_cast %195 : vector<20x160xf32> to vector<1x1x20x160xf32>
    tpu.vector_store %arg7[%c0_192, %c0_193, %c0_194, %c0_195], %198 {strides = array<i32>} : memref<1x1x20x160xf32, #tpu.memory_space<vmem>>, vector<1x1x20x160xf32>,
    return
  }
  func.func @transform_0(%arg0: i32, %arg1: i32) -> (i32, i32, i32, i32) {
    %c9_i32 = arith.constant 9 : i32
    %0 = arith.muli %arg0, %c9_i32 : i32
    %c2_i32 = arith.constant 2 : i32
    %1 = arith.muli %c2_i32, %arg1 : i32
    %2 = arith.addi %0, %1 : i32
    %c0_i32 = arith.constant 0 : i32
    %3 = arith.addi %2, %c0_i32 : i32
    %c0_i32_0 = arith.constant 0 : i32
    %c0_i32_1 = arith.constant 0 : i32
    %c0_i32_2 = arith.constant 0 : i32
    %c0_i32_3 = arith.constant 0 : i32
    return %3, %c0_i32_0, %c0_i32_1, %c0_i32_2 : i32, i32, i32, i32
  }
  func.func @transform_1(%arg0: i32, %arg1: i32) -> (i32, i32, i32, i32) {
    %c9_i32 = arith.constant 9 : i32
    %0 = arith.muli %arg0, %c9_i32 : i32
    %c2_i32 = arith.constant 2 : i32
    %1 = arith.muli %c2_i32, %arg1 : i32
    %2 = arith.addi %0, %1 : i32
    %c1_i32 = arith.constant 1 : i32
    %3 = arith.addi %2, %c1_i32 : i32
    %c0_i32 = arith.constant 0 : i32
    %c0_i32_0 = arith.constant 0 : i32
    %c0_i32_1 = arith.constant 0 : i32
    %c0_i32_2 = arith.constant 0 : i32
    return %3, %c0_i32, %c0_i32_0, %c0_i32_1 : i32, i32, i32, i32
  }
  func.func @transform_2(%arg0: i32, %arg1: i32) -> (i32, i32, i32, i32) {
    %c9_i32 = arith.constant 9 : i32
    %0 = arith.muli %arg0, %c9_i32 : i32
    %c2_i32 = arith.constant 2 : i32
    %1 = arith.muli %c2_i32, %arg1 : i32
    %2 = arith.addi %0, %1 : i32
    %c2_i32_0 = arith.constant 2 : i32
    %3 = arith.addi %2, %c2_i32_0 : i32
    %c0_i32 = arith.constant 0 : i32
    %c0_i32_1 = arith.constant 0 : i32
    %c0_i32_2 = arith.constant 0 : i32
    %c0_i32_3 = arith.constant 0 : i32
    return %3, %c0_i32, %c0_i32_1, %c0_i32_2 : i32, i32, i32, i32
  }
  func.func @transform_3(%arg0: i32, %arg1: i32) -> (i32, i32, i32) {
    %c0_i32 = arith.constant 0 : i32
    %c0_i32_0 = arith.constant 0 : i32
    %c0_i32_1 = arith.constant 0 : i32
    %c0_i32_2 = arith.constant 0 : i32
    return %c0_i32, %c0_i32_0, %c0_i32_1 : i32, i32, i32
  }
  func.func @transform_4(%arg0: i32, %arg1: i32) -> (i32, i32) {
    %c0_i32 = arith.constant 0 : i32
    %c0_i32_0 = arith.constant 0 : i32
    %c0_i32_1 = arith.constant 0 : i32
    return %c0_i32, %c0_i32_0 : i32, i32
  }
  func.func @transform_5(%arg0: i32, %arg1: i32) -> (i32, i32, i32, i32) {
    %c0_i32 = arith.constant 0 : i32
    %c0_i32_0 = arith.constant 0 : i32
    %c0_i32_1 = arith.constant 0 : i32
    return %arg0, %arg1, %c0_i32, %c0_i32_0 : i32, i32, i32, i32
  }
}

</mosaic_0001>

<bundles_post_ra>
// kernel: mixed3a.1
= control target key start
LH: loop header
LB: loop body
LE: loop exit
PB: predicated region body
PF: predicated region fallthrough
CT: control target
= control target key end

     0   :  { %s4901_s18 = smov 0   ;;  %s4903_s19 = smov 0   ;;  %s6438_s0 = inlined_call_operand.vmem [shape: f32[18,4,32,64], index: 0, kind: input, shape index: {}, may-alias: {0,1,2}]   ;;  %s6439_s1 = inlined_call_operand.vmem [shape: f32[18,4,32,64], index: 1, kind: input, shape index: {}, may-alias: {0,1,2}]   ;;  %s6440_s2 = inlined_call_operand.vmem [shape: f32[18,4,32,64], index: 2, kind: input, shape index: {}, may-alias: {0,1,2}]   ;;  %s6441_s3 = inlined_call_operand.vmem [shape: f32[27,64,128], index: 3, kind: input, shape index: {}]   ;;  %s6442_s4 = inlined_call_operand.vmem [shape: f32[1,128], index: 4, kind: input, shape index: {}]   ;;  %s6443_s5 = inlined_call_operand.vmem [shape: f32[2,4,20,160], index: 5, kind: output, shape index: {}]  }
   0x1   :  { %s4905_s20 = smov 0   ;;  %s4907_s21 = smov 0  }
   0x2   :  { %s4909_s22 = smov 0  }
   0x3 LB: > { %s24_s23 = sadd.s32 1, %s4858_s20  ;;  %s27_s24 = sadd.s32 1, %s4862_s21  ;;  %s4866_s22 = sphi %s4909_s22, %s15_s22   ;;  %s4862_s21 = sphi %s4907_s21, %s6455_s21   ;;  %s4858_s20 = sphi %s4905_s20, %s6454_s20   ;;  %s4854_s19 = sphi %s4903_s19, %s6453_s19   ;;  %s4850_s18 = sphi %s4901_s18, %s6452_s18  }
   0x4   : > { %p25_p0 = scmp.ge.s32.totalorder %s24_s23, 4  ;;  %p3409_p1 = scmp.ge.s32.totalorder %s4866_s22, 1 }
   0x5   : > { %p265_p2 = scmp.lt.s32.totalorder %s4866_s22, 9 }
   0x6   : > { %s6457_s23 = smov (%p25_p0, %s24_s23), 0  ;;  %s6459_s24 = smov (!%p25_p0, %s27_s24), %s4862_s21 }
   0x7   : > { %p266_p3 = pnand %p3409_p1, %p265_p2  ;;  %p29_p4 = scmp.ge.s32.totalorder %s6459_s24, 2 }
   0x9   : > { %s6461_s24 = smov (%p29_p4, %s6459_s24), 0  ;;  %269 = sbr.rel (%p266_p3) target bundleno = 639 (0x27f), region = 40 }
   0xe   : > { %v3430_v0 = vld [vmem:[%s6441_s3 + $0x78] sm:$0xff]  ;;  %s318_s29 = smul.u32 9, %s4854_s19  ;;  %v4868_v2 = vmov 0.0   ;;  %v3429_v3 = vld [vmem:[%s6441_s3 + $0x70] sm:$0xff]  ;;  %s3410_s9 = sshll.u32 %s4850_s18, 1  ;;  %v3428_v5 = vld [vmem:[%s6441_s3 + $0x68] sm:$0xff] }
   0xf   : > { %v374_v1 = vld [vmem:[%s6441_s3 + $0x38] sm:$0xff]  ;;  %4057 = vmatprep.subr.mxu0 %v4868_v2  ;;  %4082 = vmatprep.subr.mxu1 %v4868_v2  ;;  %v373_v4 = vld [vmem:[%s6441_s3 + $0x30] sm:$0xff]  ;;  %v372_v6 = vld [vmem:[%s6441_s3 + $0x28] sm:$0xff]  ;;  %vm391_vm0 = vcmask 523264   ;;  %vm4869_vm1 = vmmov 0   ;;  %s4870_s27 = smov 64  }
  0x10   : > { %4058 = vmatpush3.msra.mxu0 %v3430_v0  ;;  %4083 = vmatpush3.msra.mxu1 %v374_v1  ;;  %s4951_s10 = sadd.s32 %s3410_s9, %s318_s29  ;;  %v3427_v7 = vld [vmem:[%s6441_s3 + $0x60] sm:$0xff]  ;;  %v3426_v9 = vld [vmem:[%s6441_s3 + $0x58] sm:$0xff]  ;;  %v3425_v11 = vld [vmem:[%s6441_s3 + $0x50] sm:$0xff]  ;;  %p355_p8 = scmp.lt.s32.totalorder %s4854_s19, 1  ;;  %vm3282_vm2 = vcmask 261120   ;;  %vm3287_vm3 = vcmask 257024  }
  0x11   : > { %4059 = vmatprep.subr.mxu0 %v4868_v2  ;;  %4084 = vmatprep.subr.mxu1 %v4868_v2  ;;  %p321_p5 = scmp.lt.s32.totalorder %s4951_s10, 17  ;;  %v371_v8 = vld [vmem:[%s6441_s3 + $0x20] sm:$0xff]  ;;  %v370_v10 = vld [vmem:[%s6441_s3 + $0x18] sm:$0xff]  ;;  %v369_v12 = vld [vmem:[%s6441_s3 + $0x10] sm:$0xff]  ;;  %s332_s15 = sadd.s32 1, %s4951_s10 }
  0x12   : > { %4060 = vmatpush3.msra.mxu0 %v3429_v3  ;;  %4085 = vmatpush3.msra.mxu1 %v373_v4  ;;  %v3424_v13 = vld [vmem:[%s6441_s3 + $0x48] sm:$0xff]  ;;  %v3423_v26 = vld [vmem:[%s6441_s3 + $0x40] sm:$0xff]  ;;  %v3444_v34 = vld [vmem:[%s6441_s3 + $0xb8] sm:$0xff]  ;;  %p333_p6 = scmp.lt.s32.totalorder %s332_s15, 17  ;;  %s345_s12 = sadd.s32 2, %s4951_s10 }
  0x13   : > { %4061 = vmatprep.subr.mxu0 %v4868_v2  ;;  %4086 = vmatprep.subr.mxu1 %v4868_v2  ;;  %s322_s26 = scalar_select %p321_p5, %s4951_s10, 17  ;;  %v368_v16 = vld [vmem:[%s6441_s3 + $0x8] sm:$0xff]  ;;  %v367_v28 = vld [vmem:[%s6441_s3] sm:$0xff]  ;;  %v3458_v35 = vld [vmem:[%s6441_s3 + $0xf8] sm:$0xff] }
  0x14   : > { %4062 = vmatpush3.msra.mxu0 %v3428_v5  ;;  %4087 = vmatpush3.msra.mxu1 %v372_v6  ;;  %v3443_v39 = vld [vmem:[%s6441_s3 + $0xb0] sm:$0xff]  ;;  %v3442_v43 = vld [vmem:[%s6441_s3 + $0xa8] sm:$0xff]  ;;  %v3441_v52 = vld [vmem:[%s6441_s3 + $0xa0] sm:$0xff]  ;;  %s6463_s15 = smov (!%p333_p6, %s332_s15), 17  ;;  %p346_p7 = scmp.lt.s32.totalorder %s345_s12, 17 }
  0x15   : > { %4063 = vmatprep.subr.mxu0 %v4868_v2  ;;  %4088 = vmatprep.subr.mxu1 %v4868_v2  ;;  %s3757_s6 = sshll.u32 %s322_s26, 7  ;;  %v3457_v40 = vld [vmem:[%s6441_s3 + $0xf0] sm:$0xff]  ;;  %v3456_v44 = vld [vmem:[%s6441_s3 + $0xe8] sm:$0xff]  ;;  %v3455_v53 = vld [vmem:[%s6441_s3 + $0xe0] sm:$0xff]  ;;  %s3758_s17 = sshll.u32 %s6463_s15, 7 }
  0x16   : > { %4064 = vmatpush3.msra.mxu0 %v3427_v7  ;;  %4089 = vmatpush3.msra.mxu1 %v371_v8  ;;  %s4988_s14 = scalar_lea.vmem %s6438_s0, %s3757_s6  ;;  %v3440_v57 = vld [vmem:[%s6441_s3 + $0x98] sm:$0xff]  ;;  %v3439_v0 = vld [vmem:[%s6441_s3 + $0x90] sm:$0xff]  ;;  %s5448_s30 = scalar_lea.vmem %s6439_s1, %s3758_s17 }
  0x17   : > { %4065 = vmatprep.subr.mxu0 %v4868_v2  ;;  %4090 = vmatprep.subr.mxu1 %v4868_v2  ;;  %v3420_v14 = vld [vmem:[%s4988_s14 + $0x20] sm:$0xff]  ;;  %v5001_v18 = vld [vmem:[%s4988_s14 + $0x28] sm:$0xff]  ;;  %v5014_v22 = vld [vmem:[%s4988_s14 + $0x30] sm:$0xf]  ;;  %s6465_s12 = smov (!%p346_p7, %s345_s12), 17  ;;  %p357_p9 = scmp.lt.s32.totalorder %s4850_s18, 3 }
  0x18   : > { %v364_v15 = vld [vmem:[%s4988_s14] sm:$0xff]  ;;  %4066 = vmatpush3.msra.mxu0 %v3426_v9  ;;  %4091 = vmatpush3.msra.mxu1 %v370_v10  ;;  %v5004_v19 = vld [vmem:[%s4988_s14 + $0x8] sm:$0xff]  ;;  %v5017_v23 = vld [vmem:[%s4988_s14 + $0x10] sm:$0xf]  ;;  %s3759_s16 = sshll.u32 %s6465_s12, 7  ;;  %s6467_s19 = smov (!%p355_p8, %s4854_s19), 1 }
  0x19   : > { %v379_v17 = vmax.f32 %v364_v15, %v3420_v14  ;;  %4067 = vmatprep.subr.mxu0 %v4868_v2  ;;  %4092 = vmatprep.subr.mxu1 %v4868_v2  ;;  %v5009_v20 = vld [vmem:[%s4988_s14 + $0x1] sm:$0xff]  ;;  %v380_v21 = vmax.f32 %v5004_v19, %v5001_v18  ;;  %v381_v25 = vmax.f32 %v5017_v23, %v5014_v22  ;;  %v5035_v30 = vld [vmem:[%s4988_s14 + $0x9] sm:$0xff]  ;;  %v5046_v33 = vld [vmem:[%s4988_s14 + $0x11] sm:$0xf]  ;;  %s5894_s12 = scalar_lea.vmem %s6440_s2, %s3759_s16  ;;  %s6469_s18 = smov (!%p357_p9, %s4850_s18), 3 }
  0x1a   : > { %4068 = vmatpush3.msra.mxu0 %v3425_v11  ;;  %4093 = vmatpush3.msra.mxu1 %v369_v12  ;;  %v5028_v27 = vld [vmem:[%s4988_s14 + $0x40] sm:$0xff]  ;;  %v5043_v32 = vld [vmem:[%s4988_s14 + $0x48] sm:$0xff]  ;;  %v5061_v38 = vld [vmem:[%s4988_s14 + $0x50] sm:$0xf] }
  0x1b   : > { %v573_v24 = vmax.f32 %v379_v17, %v5009_v20  ;;  %4069 = vmatprep.subr.mxu0 %v4868_v2  ;;  %4094 = vmatprep.subr.mxu1 %v4868_v2  ;;  %v574_v31 = vmax.f32 %v380_v21, %v5035_v30  ;;  %v575_v37 = vmax.f32 %v381_v25, %v5046_v33  ;;  %v5073_v42 = vld [vmem:[%s4988_s14 + $0x60] sm:$0xff]  ;;  %v5088_v47 = vld [vmem:[%s4988_s14 + $0x68] sm:$0xff]  ;;  %v5098_v51 = vld [vmem:[%s4988_s14 + $0x70] sm:$0xf] }
  0x1c   : > { %4070 = vmatpush3.msra.mxu0 %v3424_v13  ;;  %4095 = vmatpush3.msra.mxu1 %v368_v16  ;;  %v5085_v46 = vld [vmem:[%s4988_s14 + $0x41] sm:$0xff]  ;;  %v5095_v50 = vld [vmem:[%s4988_s14 + $0x49] sm:$0xff]  ;;  %v5115_v56 = vld [vmem:[%s4988_s14 + $0x51] sm:$0xf] }
  0x1d   : > { %v681_v29 = vmax.f32 %v573_v24, %v5028_v27  ;;  %4071 = vmatprep.subr.mxu0 %v4868_v2  ;;  %4096 = vmatprep.subr.mxu1 %v4868_v2  ;;  %v682_v36 = vmax.f32 %v574_v31, %v5043_v32  ;;  %v683_v41 = vmax.f32 %v575_v37, %v5061_v38  ;;  %v3454_v58 = vld [vmem:[%s6441_s3 + $0xd8] sm:$0xff]  ;;  %v5129_v60 = vld [vmem:[%s4988_s14 + $0x5] sm:$0xff]  ;;  %v5140_v63 = vld [vmem:[%s4988_s14 + $0xd] sm:$0xff] }
  0x1e   : > { %4072 = vmatpush3.msra.mxu0 %v3423_v26  ;;  %4073 = vmatprep.mubr.msk.f32.mxu0 %vm4869_vm1, %v4868_v2  ;;  %v5137_v62 = vld [vmem:[%s4988_s14 + $0x25] sm:$0xff]  ;;  %v3453_v4 = vld [vmem:[%s6441_s3 + $0xd0] sm:$0xff]  ;;  %v3472_v13 = vld [vmem:[%s6441_s3 + $0x138] sm:$0xff] }
  0x1f   : > { %4097 = vmatpush3.msra.mxu1 %v367_v28  ;;  %4098 = vmatprep.mubr.msk.f32.mxu1 %vm4869_vm1, %v4868_v2  ;;  %v789_v45 = vmax.f32 %v681_v29, %v5073_v42  ;;  %v790_v49 = vmax.f32 %v682_v36, %v5088_v47  ;;  %v791_v55 = vmax.f32 %v683_v41, %v5098_v51  ;;  %v5158_v5 = vld [vmem:[%s4988_s14 + $0x2d] sm:$0xff]  ;;  %v5161_v6 = vld [vmem:[%s4988_s14 + $0x15] sm:$0xf]  ;;  %v3437_v11 = vld [vmem:[%s6441_s3 + $0x80] sm:$0xff] }
  0x20   : > { %4074 = vmatmul.mubr.msk.f32.vlgmr.msra.gmra.mxu0 %vm391_vm0, %v3420_v14  ;;  %4099 = vmatmul.mubr.msk.f32.vlgmr.msra.gmra.mxu1 %vm391_vm0, %v364_v15  ;;  %v3438_v9 = vld [vmem:[%s6441_s3 + $0x88] sm:$0xff]  ;;  %v3451_v12 = vld [vmem:[%s6441_s3 + $0xc0] sm:$0xff]  ;;  %v3486_v14 = vld [vmem:[%s6441_s3 + $0x178] sm:$0xff] }
  0x21   : > { %4107 = vmatprep.subr.mxu0 %v4868_v2  ;;  %4132 = vmatprep.subr.mxu1 %v4868_v2  ;;  %v896_v48 = vmax.f32 %v789_v45, %v5085_v46  ;;  %v897_v54 = vmax.f32 %v790_v49, %v5095_v50  ;;  %v898_v59 = vmax.f32 %v791_v55, %v5115_v56  ;;  %v3452_v10 = vld [vmem:[%s6441_s3 + $0xc8] sm:$0xff]  ;;  %v3471_v15 = vld [vmem:[%s6441_s3 + $0x130] sm:$0xff]  ;;  %v3468_v21 = vld [vmem:[%s6441_s3 + $0x118] sm:$0xff] }
  0x22   : > { %4108 = vmatpush3.msra.mxu0 %v3444_v34  ;;  %4133 = vmatpush3.msra.mxu1 %v3458_v35  ;;  %v3485_v16 = vld [vmem:[%s6441_s3 + $0x170] sm:$0xff]  ;;  %v3470_v17 = vld [vmem:[%s6441_s3 + $0x128] sm:$0xff]  ;;  %v3479_v28 = vld [vmem:[%s6441_s3 + $0x140] sm:$0xff] }
  0x23   : > { %4109 = vmatprep.subr.mxu0 %v4868_v2  ;;  %4134 = vmatprep.subr.mxu1 %v4868_v2  ;;  %v5132_v61 = vmax.f32 %v896_v48, %v5129_v60  ;;  %v5148_v3 = vmax.f32 %v897_v54, %v5140_v63  ;;  %v5168_v8 = vmax.f32 %v898_v59, %v5161_v6  ;;  %v3481_v24 = vld [vmem:[%s6441_s3 + $0x150] sm:$0xff]  ;;  %v3466_v25 = vld [vmem:[%s6441_s3 + $0x108] sm:$0xff]  ;;  %v3497_v29 = vld [vmem:[%s6441_s3 + $0x1b8] sm:$0xff] }
  0x24   : > { %4110 = vmatpush3.msra.mxu0 %v3443_v39  ;;  %4135 = vmatpush3.msra.mxu1 %v3457_v40  ;;  %v3480_v26 = vld [vmem:[%s6441_s3 + $0x148] sm:$0xff]  ;;  %v3496_v31 = vld [vmem:[%s6441_s3 + $0x1b0] sm:$0xff]  ;;  %v3494_v35 = vld [vmem:[%s6441_s3 + $0x1a0] sm:$0xff] }
  0x25   : > { %4111 = vmatprep.subr.mxu0 %v4868_v2  ;;  %4136 = vmatprep.subr.mxu1 %v4868_v2  ;;  %v3509_v34 = vld [vmem:[%s6441_s3 + $0x1e8] sm:$0xff]  ;;  %v3508_v36 = vld [vmem:[%s6441_s3 + $0x1e0] sm:$0xff]  ;;  %v3493_v37 = vld [vmem:[%s6441_s3 + $0x198] sm:$0xff] }
  0x26   : > { %4112 = vmatpush3.msra.mxu0 %v3442_v43  ;;  %4137 = vmatpush3.msra.mxu1 %v3456_v44  ;;  %v3492_v39 = vld [vmem:[%s6441_s3 + $0x190] sm:$0xff]  ;;  %v3491_v41 = vld [vmem:[%s6441_s3 + $0x188] sm:$0xff]  ;;  %v3490_v43 = vld [vmem:[%s6441_s3 + $0x180] sm:$0xff] }
  0x27   : > { %4076 = vmatprep.mubr.msk.f32.mxu0 %vm4869_vm1, %v4868_v2  ;;  %4101 = vmatprep.mubr.msk.f32.mxu1 %vm4869_vm1, %v4868_v2  ;;  %v3506_v40 = vld [vmem:[%s6441_s3 + $0x1d0] sm:$0xff]  ;;  %v3504_v44 = vld [vmem:[%s6441_s3 + $0x1c0] sm:$0xff]  ;;  %v3522_v45 = vld [vmem:[%s6441_s3 + $0x238] sm:$0xff] }
  0x28   : > { %4113 = vmatprep.subr.mxu0 %v4868_v2  ;;  %4138 = vmatprep.subr.mxu1 %v4868_v2  ;;  %v3532_v48 = vld [vmem:[%s6441_s3 + $0x270] sm:$0xff]  ;;  %v3520_v49 = vld [vmem:[%s6441_s3 + $0x228] sm:$0xff]  ;;  %v3529_v54 = vld [vmem:[%s6441_s3 + $0x258] sm:$0xff] }
  0x29   : > { %4077 = vmatmul.mubr.msk.f32.gmra.mxu0 %vm391_vm0, %v5001_v18  ;;  %4102 = vmatmul.mubr.msk.f32.gmra.mxu1 %vm391_vm0, %v5004_v19  ;;  %v3484_v18 = vld [vmem:[%s6441_s3 + $0x168] sm:$0xff]  ;;  %v3469_v19 = vld [vmem:[%s6441_s3 + $0x120] sm:$0xff]  ;;  %v3503_v55 = vld [vmem:[%s4988_s14 + $0x35] sm:$0xf] }
  0x2a   : > { %4114 = vmatpush3.msra.mxu0 %v3441_v52  ;;  %4139 = vmatpush3.msra.mxu1 %v3455_v53  ;;  %v3530_v52 = vld [vmem:[%s6441_s3 + $0x260] sm:$0xff]  ;;  %v3518_v53 = vld [vmem:[%s6441_s3 + $0x218] sm:$0xff]  ;;  %v3527_v59 = vld [vmem:[%s6441_s3 + $0x248] sm:$0xff] }
  0x2b   : > { %4115 = vmatprep.subr.mxu0 %v4868_v2  ;;  %4140 = vmatprep.subr.mxu1 %v4868_v2 }
  0x2c   : > { %4116 = vmatpush3.msra.mxu0 %v3440_v57  ;;  %4141 = vmatpush3.msra.mxu1 %v3454_v58  ;;  %v3528_v57 = vld [vmem:[%s6441_s3 + $0x250] sm:$0xff]  ;;  %v3516_v58 = vld [vmem:[%s6441_s3 + $0x208] sm:$0xff] }
  0x2d   : > { %4079 = vmatprep.mubr.msk.f32.mxu0 %vm4869_vm1, %v4868_v2  ;;  %4104 = vmatprep.mubr.msk.f32.mxu1 %vm4869_vm1, %v4868_v2 }
  0x2e   : > { %4117 = vmatprep.subr.mxu0 %v4868_v2  ;;  %4142 = vmatprep.subr.mxu1 %v4868_v2 }
  0x2f   : > { %4080 = vmatmul.mubr.msk.f32.gmra.mxu0 %vm391_vm0, %v5014_v22  ;;  %4105 = vmatmul.mubr.msk.f32.gmra.mxu1 %vm391_vm0, %v5017_v23  ;;  %v3482_v22 = vld [vmem:[%s6441_s3 + $0x158] sm:$0xff]  ;;  %v3467_v23 = vld [vmem:[%s6441_s3 + $0x110] sm:$0xff] }
  0x30   : > { %4118 = vmatpush3.msra.mxu0 %v3439_v0  ;;  %4143 = vmatpush3.msra.mxu1 %v3453_v4  ;;  %v1214_v0 = vld [vmem:[%s4988_s14 + $0x6] sm:$0xff] }
  0x31   : > { %4119 = vmatprep.subr.mxu0 %v4868_v2  ;;  %4144 = vmatprep.subr.mxu1 %v4868_v2  ;;  %v1321_v4 = vld [vmem:[%s5448_s30] sm:$0xff] }
  0x32   : > { %4120 = vmatpush3.msra.mxu0 %v3438_v9  ;;  %4145 = vmatpush3.msra.mxu1 %v3452_v10  ;;  %v3558_v9 = vld [vmem:[%s6441_s3 + $0x2f8] sm:$0xff]  ;;  %v3546_v10 = vld [vmem:[%s6441_s3 + $0x2b0] sm:$0xff] }
  0x33   : > { %4121 = vmatprep.subr.mxu0 %v4868_v2  ;;  %4146 = vmatprep.subr.mxu1 %v4868_v2 }
  0x34   : > { %4122 = vmatpush3.msra.mxu0 %v3437_v11  ;;  %4123 = vmatprep.mubr.msk.f32.mxu0 %vm4869_vm1, %v4868_v2  ;;  %v3557_v11 = vld [vmem:[%s6441_s3 + $0x2f0] sm:$0xff] }
  0x35   : > { %4147 = vmatpush3.msra.mxu1 %v3451_v12  ;;  %4148 = vmatprep.mubr.msk.f32.mxu1 %vm4869_vm1, %v4868_v2  ;;  %v1215_v12 = vld [vmem:[%s4988_s14 + $0xe] sm:$0xff] }
  0x36   : > { %4124 = vmatmul.mubr.msk.f32.vlgmr.msra.gmra.mxu0 %vm391_vm0, %v5009_v20  ;;  %4149 = vmatmul.mubr.msk.f32.vlgmr.msra.gmra.mxu1 %vm391_vm0, %v5028_v27  ;;  %v3483_v20 = vld [vmem:[%s6441_s3 + $0x160] sm:$0xff] }
  0x37   : > { %4157 = vmatprep.subr.mxu0 %v4868_v2  ;;  %4182 = vmatprep.subr.mxu1 %v4868_v2  ;;  %v3465_v27 = vld [vmem:[%s6441_s3 + $0x100] sm:$0xff] }
  0x38   : > { %4158 = vmatpush3.msra.mxu0 %v3472_v13  ;;  %4183 = vmatpush3.msra.mxu1 %v3486_v14  ;;  %v3545_v13 = vld [vmem:[%s6441_s3 + $0x2a8] sm:$0xff] }
  0x39   : > { %4159 = vmatprep.subr.mxu0 %v4868_v2  ;;  %4184 = vmatprep.subr.mxu1 %v4868_v2  ;;  %v3556_v14 = vld [vmem:[%s6441_s3 + $0x2e8] sm:$0xff] }
  0x3a   : > { %4126 = vmatprep.mubr.msk.f32.mxu0 %vm4869_vm1, %v4868_v2  ;;  %4160 = vmatpush3.msra.mxu0 %v3471_v15  ;;  %v1322_v15 = vld [vmem:[%s5448_s30 + $0x8] sm:$0xff] }
  0x3b   : > { %4185 = vmatpush3.msra.mxu1 %v3485_v16  ;;  %4127 = vmatmul.mubr.msk.f32.gmra.mxu0 %vm391_vm0, %v5035_v30  ;;  %v3511_v30 = vld [vmem:[%s6441_s3 + $0x1f8] sm:$0xff]  ;;  %v3544_v16 = vld [vmem:[%s6441_s3 + $0x2a0] sm:$0xff] }
  0x3c   : > { %4161 = vmatprep.subr.mxu0 %v4868_v2  ;;  %4186 = vmatprep.subr.mxu1 %v4868_v2 }
  0x3d   : > { %4151 = vmatprep.mubr.msk.f32.mxu1 %vm4869_vm1, %v4868_v2  ;;  %4162 = vmatpush3.msra.mxu0 %v3470_v17  ;;  %v3555_v17 = vld [vmem:[%s6441_s3 + $0x2e0] sm:$0xff] }
  0x3e   : > { %4187 = vmatpush3.msra.mxu1 %v3484_v18  ;;  %4163 = vmatprep.subr.mxu0 %v4868_v2  ;;  %v1216_v18 = vld [vmem:[%s4988_s14 + $0x16] sm:$0xf] }
  0x3f   : > { %4152 = vmatmul.mubr.msk.f32.gmra.mxu1 %vm391_vm0, %v5043_v32  ;;  %4188 = vmatprep.subr.mxu1 %v4868_v2  ;;  %v3510_v32 = vld [vmem:[%s6441_s3 + $0x1f0] sm:$0xff] }
  0x40   : > { %4129 = vmatprep.mubr.msk.f32.mxu0 %vm4869_vm1, %v4868_v2  ;;  %4164 = vmatpush3.msra.mxu0 %v3469_v19  ;;  %v3543_v19 = vld [vmem:[%s6441_s3 + $0x298] sm:$0xff] }
  0x41   : > { %4189 = vmatpush3.msra.mxu1 %v3483_v20  ;;  %4130 = vmatmul.mubr.msk.f32.gmra.mxu0 %vm391_vm0, %v5046_v33  ;;  %v3495_v33 = vld [vmem:[%s6441_s3 + $0x1a8] sm:$0xff]  ;;  %v3554_v20 = vld [vmem:[%s6441_s3 + $0x2d8] sm:$0xff] }
  0x42   : > { %4165 = vmatprep.subr.mxu0 %v4868_v2  ;;  %4190 = vmatprep.subr.mxu1 %v4868_v2 }
  0x43   : > { %4154 = vmatprep.mubr.msk.f32.mxu1 %vm4869_vm1, %v4868_v2  ;;  %4166 = vmatpush3.msra.mxu0 %v3468_v21  ;;  %v1323_v21 = vld [vmem:[%s5448_s30 + $0x10] sm:$0xf] }
  0x44   : > { %4191 = vmatpush3.msra.mxu1 %v3482_v22  ;;  %4167 = vmatprep.subr.mxu0 %v4868_v2  ;;  %v3542_v22 = vld [vmem:[%s6441_s3 + $0x290] sm:$0xff] }
  0x45   : > { %4155 = vmatmul.mubr.msk.f32.gmra.mxu1 %vm391_vm0, %v5061_v38  ;;  %4192 = vmatprep.subr.mxu1 %v4868_v2  ;;  %v3507_v38 = vld [vmem:[%s6441_s3 + $0x1d8] sm:$0xff] }
  0x46   : > { %4168 = vmatpush3.msra.mxu0 %v3467_v23  ;;  %4193 = vmatpush3.msra.mxu1 %v3481_v24  ;;  %v3553_v23 = vld [vmem:[%s6441_s3 + $0x2d0] sm:$0xff]  ;;  %v3541_v24 = vld [vmem:[%s6441_s3 + $0x288] sm:$0xff] }
  0x47   : > { %4169 = vmatprep.subr.mxu0 %v4868_v2  ;;  %4194 = vmatprep.subr.mxu1 %v4868_v2 }
  0x48   : > { %4170 = vmatpush3.msra.mxu0 %v3466_v25  ;;  %4195 = vmatpush3.msra.mxu1 %v3480_v26  ;;  %v3552_v25 = vld [vmem:[%s6441_s3 + $0x2c8] sm:$0xff]  ;;  %v3540_v26 = vld [vmem:[%s6441_s3 + $0x280] sm:$0xff] }
  0x49   : > { %4171 = vmatprep.subr.mxu0 %v4868_v2  ;;  %4196 = vmatprep.subr.mxu1 %v4868_v2 }
  0x4a   : > { %4172 = vmatpush3.msra.mxu0 %v3465_v27  ;;  %4173 = vmatprep.mubr.msk.f32.mxu0 %vm4869_vm1, %v4868_v2  ;;  %v3551_v27 = vld [vmem:[%s6441_s3 + $0x2c0] sm:$0xff] }
  0x4b   : > { %4197 = vmatpush3.msra.mxu1 %v3479_v28  ;;  %4198 = vmatprep.mubr.msk.f32.mxu1 %vm4869_vm1, %v4868_v2  ;;  %v3537_v28 = vld [vmem:[%s5448_s30 + $0x20] sm:$0xff] }
  0x4c   : > { %4174 = vmatmul.mubr.msk.f32.vlgmr.msra.gmra.mxu0 %vm391_vm0, %v5073_v42  ;;  %4199 = vmatmul.mubr.msk.f32.vlgmr.msra.gmra.mxu1 %vm391_vm0, %v5085_v46  ;;  %v3505_v42 = vld [vmem:[%s6441_s3 + $0x1c8] sm:$0xff]  ;;  %v3533_v46 = vld [vmem:[%s6441_s3 + $0x278] sm:$0xff] }
  0x4d   : > { %4207 = vmatprep.subr.mxu0 %v4868_v2  ;;  %4232 = vmatprep.subr.mxu1 %v4868_v2 }
  0x4e   : > { %4208 = vmatpush3.msra.mxu0 %v3497_v29  ;;  %4233 = vmatpush3.msra.mxu1 %v3511_v30  ;;  %v1536_v29 = vld [vmem:[%s5448_s30 + $0x1] sm:$0xff]  ;;  %v3572_v30 = vld [vmem:[%s6441_s3 + $0x338] sm:$0xff] }
  0x4f   : > { %4209 = vmatprep.subr.mxu0 %v4868_v2  ;;  %4234 = vmatprep.subr.mxu1 %v4868_v2 }
  0x50   : > { %4176 = vmatprep.mubr.msk.f32.mxu0 %vm4869_vm1, %v4868_v2  ;;  %4210 = vmatpush3.msra.mxu0 %v3496_v31  ;;  %v3586_v31 = vld [vmem:[%s6441_s3 + $0x378] sm:$0xff] }
  0x51   : > { %4235 = vmatpush3.msra.mxu1 %v3510_v32  ;;  %4177 = vmatmul.mubr.msk.f32.gmra.mxu0 %vm391_vm0, %v5088_v47  ;;  %v3521_v47 = vld [vmem:[%s6441_s3 + $0x230] sm:$0xff] }
  0x52   : > { %4211 = vmatprep.subr.mxu0 %v4868_v2  ;;  %4236 = vmatprep.subr.mxu1 %v4868_v2  ;;  %v3571_v32 = vld [vmem:[%s6441_s3 + $0x330] sm:$0xff] }
  0x53   : > { %4201 = vmatprep.mubr.msk.f32.mxu1 %vm4869_vm1, %v4868_v2  ;;  %4212 = vmatpush3.msra.mxu0 %v3495_v33  ;;  %v3585_v33 = vld [vmem:[%s6441_s3 + $0x370] sm:$0xff] }
  0x54   : > { %4237 = vmatpush3.msra.mxu1 %v3509_v34  ;;  %4213 = vmatprep.subr.mxu0 %v4868_v2  ;;  %v3538_v34 = vld [vmem:[%s5448_s30 + $0x28] sm:$0xff] }
  0x55   : > { %4202 = vmatmul.mubr.msk.f32.gmra.mxu1 %vm391_vm0, %v5095_v50  ;;  %4238 = vmatprep.subr.mxu1 %v4868_v2  ;;  %v3531_v50 = vld [vmem:[%s6441_s3 + $0x268] sm:$0xff] }
  0x56   : > { %4179 = vmatprep.mubr.msk.f32.mxu0 %vm4869_vm1, %v4868_v2  ;;  %4214 = vmatpush3.msra.mxu0 %v3494_v35  ;;  %v3570_v35 = vld [vmem:[%s6441_s3 + $0x328] sm:$0xff] }
  0x57   : > { %4239 = vmatpush3.msra.mxu1 %v3508_v36  ;;  %4180 = vmatmul.mubr.msk.f32.gmra.mxu0 %vm391_vm0, %v5098_v51  ;;  %v3519_v51 = vld [vmem:[%s6441_s3 + $0x220] sm:$0xff]  ;;  %v3584_v36 = vld [vmem:[%s6441_s3 + $0x368] sm:$0xff] }
  0x58   : > { %4215 = vmatprep.subr.mxu0 %v4868_v2  ;;  %4240 = vmatprep.subr.mxu1 %v4868_v2 }
  0x59   : > { %4204 = vmatprep.mubr.msk.f32.mxu1 %vm4869_vm1, %v4868_v2  ;;  %4216 = vmatpush3.msra.mxu0 %v3493_v37  ;;  %v1537_v37 = vld [vmem:[%s5448_s30 + $0x9] sm:$0xff] }
  0x5a   : > { %4241 = vmatpush3.msra.mxu1 %v3507_v38  ;;  %4217 = vmatprep.subr.mxu0 %v4868_v2  ;;  %v3569_v38 = vld [vmem:[%s6441_s3 + $0x320] sm:$0xff] }
  0x5b   : > { %4205 = vmatmul.mubr.msk.f32.gmra.mxu1 %vm391_vm0, %v5115_v56  ;;  %4242 = vmatprep.subr.mxu1 %v4868_v2  ;;  %v3517_v56 = vld [vmem:[%s6441_s3 + $0x210] sm:$0xff] }
  0x5c   : > { %4218 = vmatpush3.msra.mxu0 %v3492_v39  ;;  %4243 = vmatpush3.msra.mxu1 %v3506_v40  ;;  %v3583_v39 = vld [vmem:[%s6441_s3 + $0x360] sm:$0xff]  ;;  %v3539_v40 = vld [vmem:[%s5448_s30 + $0x30] sm:$0xf] }
  0x5d   : > { %4219 = vmatprep.subr.mxu0 %v4868_v2  ;;  %4244 = vmatprep.subr.mxu1 %v4868_v2 }
  0x5e   : > { %4220 = vmatpush3.msra.mxu0 %v3491_v41  ;;  %4245 = vmatpush3.msra.mxu1 %v3505_v42  ;;  %v3568_v41 = vld [vmem:[%s6441_s3 + $0x318] sm:$0xff] }
  0x5f   : > { %4221 = vmatprep.subr.mxu0 %v4868_v2  ;;  %4246 = vmatprep.subr.mxu1 %v4868_v2  ;;  %v3582_v42 = vld [vmem:[%s6441_s3 + $0x358] sm:$0xff] }
  0x60   : > { %4222 = vmatpush3.msra.mxu0 %v3490_v43  ;;  %4223 = vmatprep.mubr.msk.f32.mxu0 %vm4869_vm1, %v4868_v2  ;;  %v1538_v43 = vld [vmem:[%s5448_s30 + $0x11] sm:$0xf] }
  0x61   : > { %4247 = vmatpush3.msra.mxu1 %v3504_v44  ;;  %4248 = vmatprep.mubr.msk.f32.mxu1 %vm4869_vm1, %v4868_v2  ;;  %v3567_v44 = vld [vmem:[%s6441_s3 + $0x310] sm:$0xff] }
  0x62   : > { %4224 = vmatmul.mubr.msk.f32.vlgmr.msra.gmra.mxu0 %vm391_vm0, %v5129_v60  ;;  %4249 = vmatmul.mubr.msk.f32.vlgmr.msra.gmra.mxu1 %vm391_vm0, %v5137_v62  ;;  %v3515_v60 = vld [vmem:[%s6441_s3 + $0x200] sm:$0xff] }
  0x63   : > { %4257 = vmatprep.subr.mxu0 %v4868_v2  ;;  %4282 = vmatprep.subr.mxu1 %v4868_v2 }
  0x64   : > { %4258 = vmatpush3.msra.mxu0 %v3522_v45  ;;  %4283 = vmatpush3.msra.mxu1 %v3533_v46  ;;  %v3581_v45 = vld [vmem:[%s6441_s3 + $0x350] sm:$0xff]  ;;  %v3566_v46 = vld [vmem:[%s6441_s3 + $0x308] sm:$0xff] }
  0x65   : > { %4259 = vmatprep.subr.mxu0 %v4868_v2  ;;  %4284 = vmatprep.subr.mxu1 %v4868_v2 }
  0x66   : > { %4226 = vmatprep.mubr.msk.f32.mxu0 %vm4869_vm1, %v4868_v2  ;;  %4260 = vmatpush3.msra.mxu0 %v3521_v47  ;;  %v3580_v47 = vld [vmem:[%s6441_s3 + $0x348] sm:$0xff] }
  0x67   : > { %4285 = vmatpush3.msra.mxu1 %v3532_v48  ;;  %4227 = vmatmul.mubr.msk.f32.gmra.mxu0 %vm391_vm0, %v5140_v63  ;;  %v3526_v63 = vld [vmem:[%s6441_s3 + $0x240] sm:$0xff] }
  0x68   : > { %4261 = vmatprep.subr.mxu0 %v4868_v2  ;;  %4286 = vmatprep.subr.mxu1 %v4868_v2  ;;  %v3565_v48 = vld [vmem:[%s6441_s3 + $0x300] sm:$0xff] }
  0x69   : > { %4251 = vmatprep.mubr.msk.f32.mxu1 %vm4869_vm1, %v4868_v2  ;;  %4262 = vmatpush3.msra.mxu0 %v3520_v49  ;;  %v3579_v49 = vld [vmem:[%s6441_s3 + $0x340] sm:$0xff] }
  0x6a   : > { %4287 = vmatpush3.msra.mxu1 %v3531_v50  ;;  %4263 = vmatprep.subr.mxu0 %v4868_v2  ;;  %v3562_v50 = vld [vmem:[%s5448_s30 + $0x40] sm:$0xff] }
  0x6b   : > { %4252 = vmatmul.mubr.msk.f32.gmra.mxu1 %vm391_vm0, %v5158_v5  ;;  %4288 = vmatprep.subr.mxu1 %v4868_v2 }
  0x6c   : > { %4229 = vmatprep.mubr.msk.f32.mxu0 %vm4869_vm1, %v4868_v2  ;;  %4264 = vmatpush3.msra.mxu0 %v3519_v51  ;;  %v3576_v51 = vld [vmem:[%s5448_s30 + $0x60] sm:$0xff] }
  0x6d   : > { %4289 = vmatpush3.msra.mxu1 %v3530_v52  ;;  %4230 = vmatmul.mubr.msk.f32.gmra.mxu0 %vm391_vm0, %v5161_v6  ;;  %v3547_v6 = vld [vmem:[%s6441_s3 + $0x2b8] sm:$0xff] }
  0x6e   : > { %4265 = vmatprep.subr.mxu0 %v4868_v2  ;;  %4290 = vmatprep.subr.mxu1 %v4868_v2  ;;  %v3600_v52 = vld [vmem:[%s6441_s3 + $0x3b8] sm:$0xff] }
  0x6f   : > { %4254 = vmatprep.mubr.msk.f32.mxu1 %vm4869_vm1, %v4868_v2  ;;  %4266 = vmatpush3.msra.mxu0 %v3518_v53  ;;  %v3611_v53 = vld [vmem:[%s6441_s3 + $0x3f8] sm:$0xff] }
  0x70   : > { %4291 = vmatpush3.msra.mxu1 %v3529_v54  ;;  %4267 = vmatprep.subr.mxu0 %v4868_v2  ;;  %v3599_v54 = vld [vmem:[%s6441_s3 + $0x3b0] sm:$0xff] }
  0x71   : > { %4255 = vmatmul.mubr.msk.f32.gmra.mxu1 %vm391_vm0, %v3503_v55  ;;  %4292 = vmatprep.subr.mxu1 %v4868_v2  ;;  %v3610_v55 = vld [vmem:[%s6441_s3 + $0x3f0] sm:$0xff] }
  0x72   : > { %4268 = vmatpush3.msra.mxu0 %v3517_v56  ;;  %4293 = vmatpush3.msra.mxu1 %v3528_v57  ;;  %v3563_v56 = vld [vmem:[%s5448_s30 + $0x48] sm:$0xff] }
  0x73   : > { %4269 = vmatprep.subr.mxu0 %v4868_v2  ;;  %4294 = vmatprep.subr.mxu1 %v4868_v2  ;;  %v3598_v57 = vld [vmem:[%s6441_s3 + $0x3a8] sm:$0xff] }
  0x74   : > { %4270 = vmatpush3.msra.mxu0 %v3516_v58  ;;  %4295 = vmatpush3.msra.mxu1 %v3527_v59  ;;  %v3609_v58 = vld [vmem:[%s6441_s3 + $0x3e8] sm:$0xff] }
  0x75   : > { %4271 = vmatprep.subr.mxu0 %v4868_v2  ;;  %4296 = vmatprep.subr.mxu1 %v4868_v2  ;;  %v3577_v59 = vld [vmem:[%s5448_s30 + $0x68] sm:$0xff] }
  0x76   : > { %4272 = vmatpush3.msra.mxu0 %v3515_v60  ;;  %4273 = vmatprep.mubr.msk.f32.mxu0 %vm4869_vm1, %v4868_v2  ;;  %v3597_v60 = vld [vmem:[%s6441_s3 + $0x3a0] sm:$0xff] }
  0x77   : > { %4297 = vmatpush3.msra.mxu1 %v3526_v63  ;;  %4298 = vmatprep.mubr.msk.f32.mxu1 %vm4869_vm1, %v4868_v2  ;;  %v3608_v63 = vld [vmem:[%s6441_s3 + $0x3e0] sm:$0xff] }
  0x78   : > { %4274 = vmatmul.mubr.msk.f32.vlgmr.msra.gmra.mxu0 %vm391_vm0, %v1214_v0  ;;  %4299 = vmatmul.mubr.msk.f32.vlgmr.msra.gmra.mxu1 %vm391_vm0, %v1321_v4  ;;  %v3564_v0 = vld [vmem:[%s5448_s30 + $0x50] sm:$0xf]  ;;  %v3596_v4 = vld [vmem:[%s6441_s3 + $0x398] sm:$0xff] }
  0x79   : > { %4307 = vmatprep.subr.mxu0 %v4868_v2  ;;  %4332 = vmatprep.subr.mxu1 %v4868_v2 }
  0x7a   : > { %4308 = vmatpush3.msra.mxu0 %v3547_v6  ;;  %4333 = vmatpush3.msra.mxu1 %v3558_v9  ;;  %v3607_v6 = vld [vmem:[%s6441_s3 + $0x3d8] sm:$0xff]  ;;  %v3578_v9 = vld [vmem:[%s5448_s30 + $0x70] sm:$0xf] }
  0x7b   : > { %4309 = vmatprep.subr.mxu0 %v4868_v2  ;;  %4334 = vmatprep.subr.mxu1 %v4868_v2 }
  0x7c   : > { %4276 = vmatprep.mubr.msk.f32.mxu0 %vm4869_vm1, %v4868_v2  ;;  %4310 = vmatpush3.msra.mxu0 %v3546_v10  ;;  %v3595_v10 = vld [vmem:[%s6441_s3 + $0x390] sm:$0xff] }
  0x7d   : > { %4335 = vmatpush3.msra.mxu1 %v3557_v11  ;;  %4277 = vmatmul.mubr.msk.f32.gmra.mxu0 %vm391_vm0, %v1215_v12  ;;  %v3606_v11 = vld [vmem:[%s6441_s3 + $0x3d0] sm:$0xff]  ;;  %v3594_v12 = vld [vmem:[%s6441_s3 + $0x388] sm:$0xff] }
  0x7e   : > { %4311 = vmatprep.subr.mxu0 %v4868_v2  ;;  %4336 = vmatprep.subr.mxu1 %v4868_v2 }
  0x7f   : > { %4301 = vmatprep.mubr.msk.f32.mxu1 %vm4869_vm1, %v4868_v2  ;;  %4312 = vmatpush3.msra.mxu0 %v3545_v13  ;;  %v3605_v13 = vld [vmem:[%s6441_s3 + $0x3c8] sm:$0xff] }
  0x80   : > { %4337 = vmatpush3.msra.mxu1 %v3556_v14  ;;  %4313 = vmatprep.subr.mxu0 %v4868_v2  ;;  %v3593_v14 = vld [vmem:[%s6441_s3 + $0x380] sm:$0xff] }
  0x81   : > { %4302 = vmatmul.mubr.msk.f32.gmra.mxu1 %vm391_vm0, %v1322_v15  ;;  %4338 = vmatprep.subr.mxu1 %v4868_v2  ;;  %v3604_v15 = vld [vmem:[%s6441_s3 + $0x3c0] sm:$0xff] }
  0x82   : > { %4279 = vmatprep.mubr.msk.f32.mxu0 %vm4869_vm1, %v4868_v2  ;;  %4314 = vmatpush3.msra.mxu0 %v3544_v16  ;;  %v3590_v16 = vld [vmem:[%s5448_s30 + $0x41] sm:$0xff] }
  0x83   : > { %4339 = vmatpush3.msra.mxu1 %v3555_v17  ;;  %4280 = vmatmul.mubr.msk.f32.gmra.mxu0 %vm391_vm0, %v1216_v18  ;;  %v1966_v17 = vld [vmem:[%s5448_s30 + $0x5] sm:$0xff]  ;;  %v3625_v18 = vld [vmem:[%s6441_s3 + $0x438] sm:$0xff] }
  0x84   : > { %4315 = vmatprep.subr.mxu0 %v4868_v2  ;;  %4340 = vmatprep.subr.mxu1 %v4868_v2 }
  0x85   : > { %4304 = vmatprep.mubr.msk.f32.mxu1 %vm4869_vm1, %v4868_v2  ;;  %4316 = vmatpush3.msra.mxu0 %v3543_v19  ;;  %v3636_v19 = vld [vmem:[%s6441_s3 + $0x478] sm:$0xff] }
  0x86   : > { %4341 = vmatpush3.msra.mxu1 %v3554_v20  ;;  %4317 = vmatprep.subr.mxu0 %v4868_v2  ;;  %v3624_v20 = vld [vmem:[%s6441_s3 + $0x430] sm:$0xff] }
  0x87   : > { %4305 = vmatmul.mubr.msk.f32.gmra.mxu1 %vm391_vm0, %v1323_v21  ;;  %4342 = vmatprep.subr.mxu1 %v4868_v2  ;;  %v3635_v21 = vld [vmem:[%s6441_s3 + $0x470] sm:$0xff] }
  0x88   : > { %4318 = vmatpush3.msra.mxu0 %v3542_v22  ;;  %4343 = vmatpush3.msra.mxu1 %v3553_v23  ;;  %v3591_v22 = vld [vmem:[%s5448_s30 + $0x49] sm:$0xff] }
  0x89   : > { %4319 = vmatprep.subr.mxu0 %v4868_v2  ;;  %4344 = vmatprep.subr.mxu1 %v4868_v2  ;;  %v3623_v23 = vld [vmem:[%s6441_s3 + $0x428] sm:$0xff] }
  0x8a   : > { %4320 = vmatpush3.msra.mxu0 %v3541_v24  ;;  %4345 = vmatpush3.msra.mxu1 %v3552_v25  ;;  %v3634_v24 = vld [vmem:[%s6441_s3 + $0x468] sm:$0xff] }
  0x8b   : > { %4321 = vmatprep.subr.mxu0 %v4868_v2  ;;  %4346 = vmatprep.subr.mxu1 %v4868_v2  ;;  %v1967_v25 = vld [vmem:[%s5448_s30 + $0xd] sm:$0xff] }
  0x8c   : > { %4322 = vmatpush3.msra.mxu0 %v3540_v26  ;;  %4323 = vmatprep.mubr.msk.f32.mxu0 %vm4869_vm1, %v4868_v2  ;;  %v3622_v26 = vld [vmem:[%s6441_s3 + $0x420] sm:$0xff] }
  0x8d   : > { %4347 = vmatpush3.msra.mxu1 %v3551_v27  ;;  %4348 = vmatprep.mubr.msk.f32.mxu1 %vm4869_vm1, %v4868_v2  ;;  %v3633_v27 = vld [vmem:[%s6441_s3 + $0x460] sm:$0xff] }
  0x8e   : > { %4324 = vmatmul.mubr.msk.f32.vlgmr.msra.gmra.mxu0 %vm391_vm0, %v3537_v28  ;;  %4349 = vmatmul.mubr.msk.f32.vlgmr.msra.gmra.mxu1 %vm391_vm0, %v1536_v29  ;;  %v3592_v28 = vld [vmem:[%s5448_s30 + $0x51] sm:$0xf]  ;;  %v3621_v29 = vld [vmem:[%s6441_s3 + $0x418] sm:$0xff] }
  0x8f   : > { %4357 = vmatprep.subr.mxu0 %v4868_v2  ;;  %4382 = vmatprep.subr.mxu1 %v4868_v2 }
  0x90   : > { %4358 = vmatpush3.msra.mxu0 %v3572_v30  ;;  %4383 = vmatpush3.msra.mxu1 %v3586_v31  ;;  %v3632_v30 = vld [vmem:[%s6441_s3 + $0x458] sm:$0xff] }
  0x91   : > { %4359 = vmatprep.subr.mxu0 %v4868_v2  ;;  %4384 = vmatprep.subr.mxu1 %v4868_v2  ;;  %v1968_v31 = vld [vmem:[%s5448_s30 + $0x15] sm:$0xf] }
  0x92   : > { %4326 = vmatprep.mubr.msk.f32.mxu0 %vm4869_vm1, %v4868_v2  ;;  %4360 = vmatpush3.msra.mxu0 %v3571_v32  ;;  %v3620_v32 = vld [vmem:[%s6441_s3 + $0x410] sm:$0xff] }
  0x93   : > { %4385 = vmatpush3.msra.mxu1 %v3585_v33  ;;  %4327 = vmatmul.mubr.msk.f32.gmra.mxu0 %vm391_vm0, %v3538_v34  ;;  %v3631_v33 = vld [vmem:[%s6441_s3 + $0x450] sm:$0xff]  ;;  %v3619_v34 = vld [vmem:[%s6441_s3 + $0x408] sm:$0xff] }
  0x94   : > { %4361 = vmatprep.subr.mxu0 %v4868_v2  ;;  %4386 = vmatprep.subr.mxu1 %v4868_v2 }
  0x95   : > { %4351 = vmatprep.mubr.msk.f32.mxu1 %vm4869_vm1, %v4868_v2  ;;  %4362 = vmatpush3.msra.mxu0 %v3570_v35  ;;  %v3630_v35 = vld [vmem:[%s6441_s3 + $0x448] sm:$0xff] }
  0x96   : > { %4387 = vmatpush3.msra.mxu1 %v3584_v36  ;;  %4363 = vmatprep.subr.mxu0 %v4868_v2  ;;  %v3618_v36 = vld [vmem:[%s6441_s3 + $0x400] sm:$0xff] }
  0x97   : > { %4352 = vmatmul.mubr.msk.f32.gmra.mxu1 %vm391_vm0, %v1537_v37  ;;  %4388 = vmatprep.subr.mxu1 %v4868_v2  ;;  %v3629_v37 = vld [vmem:[%s6441_s3 + $0x440] sm:$0xff] }
  0x98   : > { %4329 = vmatprep.mubr.msk.f32.mxu0 %vm4869_vm1, %v4868_v2  ;;  %4364 = vmatpush3.msra.mxu0 %v3569_v38  ;;  %v3615_v38 = vld [vmem:[%s5448_s30 + $0x25] sm:$0xff] }
  0x99   : > { %4389 = vmatpush3.msra.mxu1 %v3583_v39  ;;  %4330 = vmatmul.mubr.msk.f32.gmra.mxu0 %vm391_vm0, %v3539_v40  ;;  %v2180_v39 = vld [vmem:[%s5448_s30 + $0x6] sm:$0xff]  ;;  %v3647_v40 = vld [vmem:[%s6441_s3 + $0x4b8] sm:$0xff] }
  0x9a   : > { %4365 = vmatprep.subr.mxu0 %v4868_v2  ;;  %4390 = vmatprep.subr.mxu1 %v4868_v2 }
  0x9b   : > { %4354 = vmatprep.mubr.msk.f32.mxu1 %vm4869_vm1, %v4868_v2  ;;  %4366 = vmatpush3.msra.mxu0 %v3568_v41  ;;  %v3661_v41 = vld [vmem:[%s6441_s3 + $0x4f8] sm:$0xff] }
  0x9c   : > { %4391 = vmatpush3.msra.mxu1 %v3582_v42  ;;  %4367 = vmatprep.subr.mxu0 %v4868_v2  ;;  %v3646_v42 = vld [vmem:[%s6441_s3 + $0x4b0] sm:$0xff] }
  0x9d   : > { %4355 = vmatmul.mubr.msk.f32.gmra.mxu1 %vm391_vm0, %v1538_v43  ;;  %4392 = vmatprep.subr.mxu1 %v4868_v2  ;;  %v3660_v43 = vld [vmem:[%s6441_s3 + $0x4f0] sm:$0xff] }
  0x9e   : > { %4368 = vmatpush3.msra.mxu0 %v3567_v44  ;;  %4393 = vmatpush3.msra.mxu1 %v3581_v45  ;;  %v3616_v44 = vld [vmem:[%s5448_s30 + $0x2d] sm:$0xff] }
  0x9f   : > { %4369 = vmatprep.subr.mxu0 %v4868_v2  ;;  %4394 = vmatprep.subr.mxu1 %v4868_v2  ;;  %v3645_v45 = vld [vmem:[%s6441_s3 + $0x4a8] sm:$0xff] }
  0xa0   : > { %4370 = vmatpush3.msra.mxu0 %v3566_v46  ;;  %4395 = vmatpush3.msra.mxu1 %v3580_v47  ;;  %v3659_v46 = vld [vmem:[%s6441_s3 + $0x4e8] sm:$0xff] }
  0xa1   : > { %4371 = vmatprep.subr.mxu0 %v4868_v2  ;;  %4396 = vmatprep.subr.mxu1 %v4868_v2  ;;  %v2181_v47 = vld [vmem:[%s5448_s30 + $0xe] sm:$0xff] }
  0xa2   : > { %4372 = vmatpush3.msra.mxu0 %v3565_v48  ;;  %4373 = vmatprep.mubr.msk.f32.mxu0 %vm4869_vm1, %v4868_v2  ;;  %v3644_v48 = vld [vmem:[%s6441_s3 + $0x4a0] sm:$0xff] }
  0xa3   : > { %4397 = vmatpush3.msra.mxu1 %v3579_v49  ;;  %4398 = vmatprep.mubr.msk.f32.mxu1 %vm4869_vm1, %v4868_v2  ;;  %v3658_v49 = vld [vmem:[%s6441_s3 + $0x4e0] sm:$0xff] }
  0xa4   : > { %4374 = vmatmul.mubr.msk.f32.vlgmr.msra.gmra.mxu0 %vm391_vm0, %v3562_v50  ;;  %4399 = vmatmul.mubr.msk.f32.vlgmr.msra.gmra.mxu1 %vm391_vm0, %v3576_v51  ;;  %v3617_v50 = vld [vmem:[%s5448_s30 + $0x35] sm:$0xf] }
  0xa5   : > { %4407 = vmatprep.subr.mxu0 %v4868_v2  ;;  %4432 = vmatprep.subr.mxu1 %v4868_v2  ;;  %v3643_v51 = vld [vmem:[%s6441_s3 + $0x498] sm:$0xff] }
  0xa6   : > { %4408 = vmatpush3.msra.mxu0 %v3600_v52  ;;  %4433 = vmatpush3.msra.mxu1 %v3611_v53  ;;  %v3657_v52 = vld [vmem:[%s6441_s3 + $0x4d8] sm:$0xff] }
  0xa7   : > { %4409 = vmatprep.subr.mxu0 %v4868_v2  ;;  %4434 = vmatprep.subr.mxu1 %v4868_v2  ;;  %v2182_v53 = vld [vmem:[%s5448_s30 + $0x16] sm:$0xf] }
  0xa8   : > { %4376 = vmatprep.mubr.msk.f32.mxu0 %vm4869_vm1, %v4868_v2  ;;  %4410 = vmatpush3.msra.mxu0 %v3599_v54  ;;  %v3642_v54 = vld [vmem:[%s6441_s3 + $0x490] sm:$0xff] }
  0xa9   : > { %4435 = vmatpush3.msra.mxu1 %v3610_v55  ;;  %4377 = vmatmul.mubr.msk.f32.gmra.mxu0 %vm391_vm0, %v3563_v56  ;;  %v3656_v55 = vld [vmem:[%s6441_s3 + $0x4d0] sm:$0xff]  ;;  %v3641_v56 = vld [vmem:[%s6441_s3 + $0x488] sm:$0xff] }
  0xaa   : > { %4411 = vmatprep.subr.mxu0 %v4868_v2  ;;  %4436 = vmatprep.subr.mxu1 %v4868_v2 }
  0xab   : > { %4401 = vmatprep.mubr.msk.f32.mxu1 %vm4869_vm1, %v4868_v2  ;;  %4412 = vmatpush3.msra.mxu0 %v3598_v57  ;;  %v3655_v57 = vld [vmem:[%s6441_s3 + $0x4c8] sm:$0xff] }
  0xac   : > { %4437 = vmatpush3.msra.mxu1 %v3609_v58  ;;  %4413 = vmatprep.subr.mxu0 %v4868_v2 }
  0xad   : > { %4402 = vmatmul.mubr.msk.f32.gmra.mxu1 %vm391_vm0, %v3577_v59  ;;  %4438 = vmatprep.subr.mxu1 %v4868_v2 }
  0xae   : > { %4379 = vmatprep.mubr.msk.f32.mxu0 %vm4869_vm1, %v4868_v2  ;;  %4414 = vmatpush3.msra.mxu0 %v3597_v60  ;;  %v3640_v60 = vld [vmem:[%s6441_s3 + $0x480] sm:$0xff] }
  0xaf   : > { %4439 = vmatpush3.msra.mxu1 %v3608_v63  ;;  %4380 = vmatmul.mubr.msk.f32.gmra.mxu0 %vm391_vm0, %v3564_v0  ;;  %v3654_v0 = vld [vmem:[%s6441_s3 + $0x4c0] sm:$0xff] }
  0xb0   : > { %4415 = vmatprep.subr.mxu0 %v4868_v2  ;;  %4440 = vmatprep.subr.mxu1 %v4868_v2 }
  0xb1   : > { %4404 = vmatprep.mubr.msk.f32.mxu1 %vm4869_vm1, %v4868_v2  ;;  %4416 = vmatpush3.msra.mxu0 %v3596_v4 }
  0xb2   : > { %4441 = vmatpush3.msra.mxu1 %v3607_v6  ;;  %4417 = vmatprep.subr.mxu0 %v4868_v2 }
  0xb3   : > { %4405 = vmatmul.mubr.msk.f32.gmra.mxu1 %vm391_vm0, %v3578_v9  ;;  %4442 = vmatprep.subr.mxu1 %v4868_v2  ;;  %v2287_v9 = vld [vmem:[%s5894_s12] sm:$0xff] }
  0xb4   : > { %4418 = vmatpush3.msra.mxu0 %v3595_v10  ;;  %4443 = vmatpush3.msra.mxu1 %v3606_v11  ;;  %v3651_v10 = vld [vmem:[%s5894_s12 + $0x20] sm:$0xff]  ;;  %v3672_v11 = vld [vmem:[%s6441_s3 + $0x538] sm:$0xff] }
  0xb5   : > { %4419 = vmatprep.subr.mxu0 %v4868_v2  ;;  %4444 = vmatprep.subr.mxu1 %v4868_v2 }
  0xb6   : > { %4420 = vmatpush3.msra.mxu0 %v3594_v12  ;;  %4445 = vmatpush3.msra.mxu1 %v3605_v13  ;;  %v3686_v12 = vld [vmem:[%s6441_s3 + $0x578] sm:$0xff]  ;;  %v3671_v13 = vld [vmem:[%s6441_s3 + $0x530] sm:$0xff] }
  0xb7   : > { %4421 = vmatprep.subr.mxu0 %v4868_v2  ;;  %4446 = vmatprep.subr.mxu1 %v4868_v2 }
  0xb8   : > { %4422 = vmatpush3.msra.mxu0 %v3593_v14  ;;  %4423 = vmatprep.mubr.msk.f32.mxu0 %vm4869_vm1, %v4868_v2  ;;  %v3685_v14 = vld [vmem:[%s6441_s3 + $0x570] sm:$0xff] }
  0xb9   : > { %4447 = vmatpush3.msra.mxu1 %v3604_v15  ;;  %4448 = vmatprep.mubr.msk.f32.mxu1 %vm4869_vm1, %v4868_v2  ;;  %v2288_v15 = vld [vmem:[%s5894_s12 + $0x8] sm:$0xff] }
  0xba   : > { %4424 = vmatmul.mubr.msk.f32.vlgmr.msra.gmra.mxu0 %vm391_vm0, %v3590_v16  ;;  %4449 = vmatmul.mubr.msk.f32.vlgmr.msra.gmra.mxu1 %vm391_vm0, %v1966_v17 }
  0xbb   : > { %4457 = vmatprep.subr.mxu0 %v4868_v2  ;;  %4482 = vmatprep.subr.mxu1 %v4868_v2 }
  0xbc   : > { %4458 = vmatpush3.msra.mxu0 %v3625_v18  ;;  %4483 = vmatpush3.msra.mxu1 %v3636_v19  ;;  %v3670_v18 = vld [vmem:[%s6441_s3 + $0x528] sm:$0xff] }
  0xbd   : > { %4459 = vmatprep.subr.mxu0 %v4868_v2  ;;  %4484 = vmatprep.subr.mxu1 %v4868_v2 }
  0xbe   : > { %4426 = vmatprep.mubr.msk.f32.mxu0 %vm4869_vm1, %v4868_v2  ;;  %4460 = vmatpush3.msra.mxu0 %v3624_v20  ;;  %v3684_v20 = vld [vmem:[%s6441_s3 + $0x568] sm:$0xff] }
  0xbf   : > { %4485 = vmatpush3.msra.mxu1 %v3635_v21  ;;  %4427 = vmatmul.mubr.msk.f32.gmra.mxu0 %vm391_vm0, %v3591_v22 }
  0xc0   : > { %4461 = vmatprep.subr.mxu0 %v4868_v2  ;;  %4486 = vmatprep.subr.mxu1 %v4868_v2 }
  0xc1   : > { %4451 = vmatprep.mubr.msk.f32.mxu1 %vm4869_vm1, %v4868_v2  ;;  %4462 = vmatpush3.msra.mxu0 %v3623_v23  ;;  %v3652_v23 = vld [vmem:[%s5894_s12 + $0x28] sm:$0xff] }
  0xc2   : > { %4487 = vmatpush3.msra.mxu1 %v3634_v24  ;;  %4463 = vmatprep.subr.mxu0 %v4868_v2  ;;  %v3669_v24 = vld [vmem:[%s6441_s3 + $0x520] sm:$0xff] }
  0xc3   : > { %4452 = vmatmul.mubr.msk.f32.gmra.mxu1 %vm391_vm0, %v1967_v25  ;;  %4488 = vmatprep.subr.mxu1 %v4868_v2  ;;  %v3683_v25 = vld [vmem:[%s6441_s3 + $0x560] sm:$0xff] }
  0xc4   : > { %4429 = vmatprep.mubr.msk.f32.mxu0 %vm4869_vm1, %v4868_v2  ;;  %4464 = vmatpush3.msra.mxu0 %v3622_v26  ;;  %v5957_v26 = vld [vmem:[%s5894_s12 + $0x10] sm:$0xf] }
  0xc5   : > { %4489 = vmatpush3.msra.mxu1 %v3633_v27  ;;  %4430 = vmatmul.mubr.msk.f32.gmra.mxu0 %vm391_vm0, %v3592_v28 }
  0xc6   : > { %4465 = vmatprep.subr.mxu0 %v4868_v2  ;;  %4490 = vmatprep.subr.mxu1 %v4868_v2 }
  0xc7   : > { %4454 = vmatprep.mubr.msk.f32.mxu1 %vm4869_vm1, %v4868_v2  ;;  %4466 = vmatpush3.msra.mxu0 %v3621_v29  ;;  %v3668_v29 = vld [vmem:[%s6441_s3 + $0x518] sm:$0xff] }
  0xc8   : > { %4491 = vmatpush3.msra.mxu1 %v3632_v30  ;;  %4467 = vmatprep.subr.mxu0 %v4868_v2 }
  0xc9   : > { %4455 = vmatmul.mubr.msk.f32.gmra.mxu1 %vm391_vm0, %v1968_v31  ;;  %4492 = vmatprep.subr.mxu1 %v4868_v2  ;;  %v3682_v31 = vld [vmem:[%s6441_s3 + $0x558] sm:$0xff] }
  0xca   : > { %4468 = vmatpush3.msra.mxu0 %v3620_v32  ;;  %4493 = vmatpush3.msra.mxu1 %v3631_v33 }
  0xcb   : > { %4469 = vmatprep.subr.mxu0 %v4868_v2  ;;  %4494 = vmatprep.subr.mxu1 %v4868_v2 }
  0xcc   : > { %4470 = vmatpush3.msra.mxu0 %v3619_v34  ;;  %4495 = vmatpush3.msra.mxu1 %v3630_v35  ;;  %v5976_v34 = vld [vmem:[%s5894_s12 + $0x30] sm:$0xf] }
  0xcd   : > { %4471 = vmatprep.subr.mxu0 %v4868_v2  ;;  %4496 = vmatprep.subr.mxu1 %v4868_v2  ;;  %v3667_v35 = vld [vmem:[%s6441_s3 + $0x510] sm:$0xff] }
  0xce   : > { %4472 = vmatpush3.msra.mxu0 %v3618_v36  ;;  %4473 = vmatprep.mubr.msk.f32.mxu0 %vm4869_vm1, %v4868_v2  ;;  %v3681_v36 = vld [vmem:[%s6441_s3 + $0x550] sm:$0xff] }
  0xcf   : > { %4497 = vmatpush3.msra.mxu1 %v3629_v37  ;;  %4498 = vmatprep.mubr.msk.f32.mxu1 %vm4869_vm1, %v4868_v2  ;;  %v3666_v37 = vld [vmem:[%s6441_s3 + $0x508] sm:$0xff] }
  0xd0   : > { %4474 = vmatmul.mubr.msk.f32.vlgmr.msra.gmra.mxu0 %vm391_vm0, %v3615_v38  ;;  %4499 = vmatmul.mubr.msk.f32.vlgmr.msra.gmra.mxu1 %vm391_vm0, %v2180_v39  ;;  %v3680_v38 = vld [vmem:[%s6441_s3 + $0x548] sm:$0xff] }
  0xd1   : > { %4507 = vmatprep.subr.mxu0 %v4868_v2  ;;  %4532 = vmatprep.subr.mxu1 %v4868_v2 }
  0xd2   : > { %4508 = vmatpush3.msra.mxu0 %v3647_v40  ;;  %4533 = vmatpush3.msra.mxu1 %v3661_v41  ;;  %v3665_v41 = vld [vmem:[%s6441_s3 + $0x500] sm:$0xff] }
  0xd3   : > { %4509 = vmatprep.subr.mxu0 %v4868_v2  ;;  %4534 = vmatprep.subr.mxu1 %v4868_v2 }
  0xd4   : > { %4476 = vmatprep.mubr.msk.f32.mxu0 %vm4869_vm1, %v4868_v2  ;;  %4510 = vmatpush3.msra.mxu0 %v3646_v42 }
  0xd5   : > { %4535 = vmatpush3.msra.mxu1 %v3660_v43  ;;  %4477 = vmatmul.mubr.msk.f32.gmra.mxu0 %vm391_vm0, %v3616_v44  ;;  %v3679_v43 = vld [vmem:[%s6441_s3 + $0x540] sm:$0xff] }
  0xd6   : > { %4511 = vmatprep.subr.mxu0 %v4868_v2  ;;  %4536 = vmatprep.subr.mxu1 %v4868_v2 }
  0xd7   : > { %4501 = vmatprep.mubr.msk.f32.mxu1 %vm4869_vm1, %v4868_v2  ;;  %4512 = vmatpush3.msra.mxu0 %v3645_v45 }
  0xd8   : > { %4537 = vmatpush3.msra.mxu1 %v3659_v46  ;;  %4513 = vmatprep.subr.mxu0 %v4868_v2  ;;  %v6008_v46 = vld [vmem:[%s5894_s12 + $0x1] sm:$0xff] }
  0xd9   : > { %4502 = vmatmul.mubr.msk.f32.gmra.mxu1 %vm391_vm0, %v2181_v47  ;;  %4538 = vmatprep.subr.mxu1 %v4868_v2  ;;  %v6011_v47 = vld [vmem:[%s5894_s12 + $0x40] sm:$0xff] }
  0xda   : > { %4479 = vmatprep.mubr.msk.f32.mxu0 %vm4869_vm1, %v4868_v2  ;;  %4514 = vmatpush3.msra.mxu0 %v3644_v48 }
  0xdb   : > { %4539 = vmatpush3.msra.mxu1 %v3658_v49  ;;  %4480 = vmatmul.mubr.msk.f32.gmra.mxu0 %vm391_vm0, %v3617_v50  ;;  %v3700_v49 = vld [vmem:[%s6441_s3 + $0x5b8] sm:$0xff] }
  0xdc   : > { %4515 = vmatprep.subr.mxu0 %v4868_v2  ;;  %4540 = vmatprep.subr.mxu1 %v4868_v2  ;;  %v3714_v50 = vld [vmem:[%s6441_s3 + $0x5f8] sm:$0xff] }
  0xdd   : > { %4504 = vmatprep.mubr.msk.f32.mxu1 %vm4869_vm1, %v4868_v2  ;;  %4516 = vmatpush3.msra.mxu0 %v3643_v51 }
  0xde   : > { %4541 = vmatpush3.msra.mxu1 %v3657_v52  ;;  %4517 = vmatprep.subr.mxu0 %v4868_v2 }
  0xdf   : > { %4505 = vmatmul.mubr.msk.f32.gmra.mxu1 %vm391_vm0, %v2182_v53  ;;  %4542 = vmatprep.subr.mxu1 %v4868_v2  ;;  %v3699_v53 = vld [vmem:[%s6441_s3 + $0x5b0] sm:$0xff] }
  0xe0   : > { %4518 = vmatpush3.msra.mxu0 %v3642_v54  ;;  %4543 = vmatpush3.msra.mxu1 %v3656_v55  ;;  %v467_v58 = vpop.f32.mrf.mxu0  ;;  %v556_v59 = vpop.f32.mrf.mxu1  ;;  %v3713_v55 = vld [vmem:[%s6441_s3 + $0x5f0] sm:$0xff] }
  0xe1   : > { %4519 = vmatprep.subr.mxu0 %v4868_v2  ;;  %4544 = vmatprep.subr.mxu1 %v4868_v2  ;;  %v5901_v63 = vadd.f32 %v556_v59, %v467_v58  ;;  %v3698_v58 = vld [vmem:[%s6441_s3 + $0x5a8] sm:$0xff] }
  0xe2   : > { %4520 = vmatpush3.msra.mxu0 %v3641_v56  ;;  %4545 = vmatpush3.msra.mxu1 %v3655_v57  ;;  %v4075_v4 = vpop.f32.mrf.mxu0  ;;  %v4100_v6 = vpop.f32.mrf.mxu1  ;;  %v6039_v56 = vld [vmem:[%s5894_s12 + $0x9] sm:$0xff] }
  0xe3   : > { %4521 = vmatprep.subr.mxu0 %v4868_v2  ;;  %4546 = vmatprep.subr.mxu1 %v4868_v2  ;;  %v6058_v4 = vld [vmem:[%s5894_s12 + $0x48] sm:$0xff] }
  0xe4   : > { %4522 = vmatpush3.msra.mxu0 %v3640_v60  ;;  %4523 = vmatprep.mubr.msk.f32.mxu0 %vm4869_vm1, %v4868_v2  ;;  %v3712_v60 = vld [vmem:[%s6441_s3 + $0x5e8] sm:$0xff] }
  0xe5   : > { %4547 = vmatpush3.msra.mxu1 %v3654_v0  ;;  %4548 = vmatprep.mubr.msk.f32.mxu1 %vm4869_vm1, %v4868_v2 }
  0xe6   : > { %4524 = vmatmul.mubr.msk.f32.vlgmr.msra.gmra.mxu0 %vm391_vm0, %v2287_v9  ;;  %4549 = vmatmul.mubr.msk.f32.vlgmr.msra.gmra.mxu1 %vm391_vm0, %v3651_v10  ;;  %v3697_v9 = vld [vmem:[%s6441_s3 + $0x5a0] sm:$0xff] }
  0xe7   : > { %4557 = vmatprep.subr.mxu0 %v4868_v2  ;;  %4582 = vmatprep.subr.mxu1 %v4868_v2 }
  0xe8   : > { %4558 = vmatpush3.msra.mxu0 %v3672_v11  ;;  %4583 = vmatpush3.msra.mxu1 %v3686_v12  ;;  %v3711_v11 = vld [vmem:[%s6441_s3 + $0x5e0] sm:$0xff]  ;;  %v6071_v12 = vld [vmem:[%s5894_s12 + $0x11] sm:$0xf] }
  0xe9   : > { %4559 = vmatprep.subr.mxu0 %v4868_v2  ;;  %4584 = vmatprep.subr.mxu1 %v4868_v2  ;;  %v472_v16 = vpop.f32.mrf.mxu0  ;;  %v561_v17 = vpop.f32.mrf.mxu1 }
  0xea   : > { %4526 = vmatprep.mubr.msk.f32.mxu0 %vm4869_vm1, %v4868_v2  ;;  %4560 = vmatpush3.msra.mxu0 %v3671_v13  ;;  %v5938_v19 = vadd.f32 %v561_v17, %v472_v16  ;;  %v3710_v16 = vld [vmem:[%s6441_s3 + $0x5d8] sm:$0xff] }
  0xeb   : > { %4585 = vmatpush3.msra.mxu1 %v3685_v14  ;;  %4527 = vmatmul.mubr.msk.f32.gmra.mxu0 %vm391_vm0, %v2288_v15  ;;  %v4078_v21 = vpop.f32.mrf.mxu0  ;;  %v4103_v22 = vpop.f32.mrf.mxu1  ;;  %v3696_v14 = vld [vmem:[%s6441_s3 + $0x598] sm:$0xff] }
  0xec   : > { %4561 = vmatprep.subr.mxu0 %v4868_v2  ;;  %4586 = vmatprep.subr.mxu1 %v4868_v2  ;;  %v3694_v21 = vld [vmem:[%s6441_s3 + $0x588] sm:$0xff] }
  0xed   : > { %4551 = vmatprep.mubr.msk.f32.mxu1 %vm4869_vm1, %v4868_v2  ;;  %4562 = vmatpush3.msra.mxu0 %v3670_v18  ;;  %v6091_v18 = vld [vmem:[%s5894_s12 + $0x50] sm:$0xf]  ;;  %v3708_v22 = vld [vmem:[%s6441_s3 + $0x5c8] sm:$0xff] }
  0xee   : > { %4587 = vmatpush3.msra.mxu1 %v3684_v20  ;;  %4563 = vmatprep.subr.mxu0 %v4868_v2  ;;  %v3709_v20 = vld [vmem:[%s6441_s3 + $0x5d0] sm:$0xff] }
  0xef   : > { %4552 = vmatmul.mubr.msk.f32.gmra.mxu1 %vm391_vm0, %v3652_v23  ;;  %4588 = vmatprep.subr.mxu1 %v4868_v2  ;;  %v477_v27 = vpop.f32.mrf.mxu0  ;;  %v566_v28 = vpop.f32.mrf.mxu1 }
  0xf0   : > { %4529 = vmatprep.mubr.msk.f32.mxu0 %vm4869_vm1, %v4868_v2  ;;  %4564 = vmatpush3.msra.mxu0 %v3669_v24  ;;  %v5966_v30 = vadd.f32 %v566_v28, %v477_v27  ;;  %v3707_v28 = vld [vmem:[%s6441_s3 + $0x5c0] sm:$0xff] }
  0xf1   : > { %4589 = vmatpush3.msra.mxu1 %v3683_v25  ;;  %4530 = vmatmul.mubr.msk.f32.gmra.mxu0 %vm391_vm0, %v5957_v26  ;;  %v4081_v32 = vpop.f32.mrf.mxu0  ;;  %v4106_v33 = vpop.f32.mrf.mxu1  ;;  %v3693_v25 = vld [vmem:[%s6441_s3 + $0x580] sm:$0xff] }
  0xf2   : > { %4565 = vmatprep.subr.mxu0 %v4868_v2  ;;  %4590 = vmatprep.subr.mxu1 %v4868_v2  ;;  %v6126_v32 = vld [vmem:[%s5894_s12 + $0x41] sm:$0xff] }
  0xf3   : > { %4554 = vmatprep.mubr.msk.f32.mxu1 %vm4869_vm1, %v4868_v2  ;;  %4566 = vmatpush3.msra.mxu0 %v3668_v29 }
  0xf4   : > { %4591 = vmatpush3.msra.mxu1 %v3682_v31  ;;  %4567 = vmatprep.subr.mxu0 %v4868_v2  ;;  %v6123_v31 = vld [vmem:[%s5894_s12 + $0x60] sm:$0xff] }
  0xf5   : > { %4555 = vmatmul.mubr.msk.f32.gmra.mxu1 %vm391_vm0, %v5976_v34  ;;  %4592 = vmatprep.subr.mxu1 %v4868_v2 }
  0xf6   : > { %4568 = vmatpush3.msra.mxu0 %v3667_v35  ;;  %4593 = vmatpush3.msra.mxu1 %v3681_v36  ;;  %v660_v39 = vpop.f32.mrf.mxu0  ;;  %v768_v40 = vpop.f32.mrf.mxu1  ;;  %v3725_v35 = vld [vmem:[%s6441_s3 + $0x638] sm:$0xff] }
  0xf7   : > { %4569 = vmatprep.subr.mxu0 %v4868_v2  ;;  %4594 = vmatprep.subr.mxu1 %v4868_v2  ;;  %v674_v42 = vadd.f32 %v660_v39, %v5901_v63  ;;  %v3739_v36 = vld [vmem:[%s6441_s3 + $0x678] sm:$0xff]  ;;  %v3724_v39 = vld [vmem:[%s6441_s3 + $0x630] sm:$0xff] }
  0xf8   : > { %4570 = vmatpush3.msra.mxu0 %v3666_v37  ;;  %4595 = vmatpush3.msra.mxu1 %v3680_v38  ;;  %v4125_v44 = vpop.f32.mrf.mxu0  ;;  %v4150_v45 = vpop.f32.mrf.mxu1 }
  0xf9   : > { %4571 = vmatprep.subr.mxu0 %v4868_v2  ;;  %4596 = vmatprep.subr.mxu1 %v4868_v2  ;;  %v6013_v48 = vadd.f32 %v768_v40, %v674_v42  ;;  %v6154_v42 = vld [vmem:[%s5894_s12 + $0x68] sm:$0xff] }
  0xfa   : > { %4572 = vmatpush3.msra.mxu0 %v3665_v41  ;;  %4573 = vmatprep.mubr.msk.f32.mxu0 %vm4869_vm1, %v4868_v2  ;;  %v3738_v41 = vld [vmem:[%s6441_s3 + $0x670] sm:$0xff]  ;;  %v3723_v44 = vld [vmem:[%s6441_s3 + $0x628] sm:$0xff] }
  0xfb   : > { %4597 = vmatpush3.msra.mxu1 %v3679_v43  ;;  %4598 = vmatprep.mubr.msk.f32.mxu1 %vm4869_vm1, %v4868_v2  ;;  %v665_v51 = vpop.f32.mrf.mxu0 }
  0xfc   : > { %4574 = vmatmul.mubr.msk.f32.vlgmr.msra.gmra.mxu0 %vm391_vm0, %v6008_v46  ;;  %4599 = vmatmul.mubr.msk.f32.vlgmr.msra.gmra.mxu1 %vm391_vm0, %v6011_v47  ;;  %v675_v52 = vadd.f32 %v665_v51, %v5938_v19  ;;  %v3695_v19 = vld [vmem:[%s6441_s3 + $0x590] sm:$0xff] }
  0xfd   : > { %4607 = vmatprep.subr.mxu0 %v4868_v2  ;;  %4632 = vmatprep.subr.mxu1 %v4868_v2  ;;  %v4128_v54 = vpop.f32.mrf.mxu0  ;;  %v6173_v51 = vld [vmem:[%s5894_s12 + $0x49] sm:$0xff] }
  0xfe   : > { %4608 = vmatpush3.msra.mxu0 %v3700_v49  ;;  %4633 = vmatpush3.msra.mxu1 %v3714_v50 }
  0xff   : > { %4609 = vmatprep.subr.mxu0 %v4868_v2  ;;  %4634 = vmatprep.subr.mxu1 %v4868_v2  ;;  %v773_v57 = vpop.f32.mrf.mxu1 }
 0x100   : > { %4576 = vmatprep.mubr.msk.f32.mxu0 %vm4869_vm1, %v4868_v2  ;;  %4610 = vmatpush3.msra.mxu0 %v3699_v53  ;;  %v6048_v59 = vadd.f32 %v773_v57, %v675_v52  ;;  %v3722_v53 = vld [vmem:[%s6441_s3 + $0x620] sm:$0xff]  ;;  %v6186_v57 = vld [vmem:[%s5894_s12 + $0x70] sm:$0xf] }
 0x101   : > { %4635 = vmatpush3.msra.mxu1 %v3713_v55  ;;  %4577 = vmatmul.mubr.msk.f32.gmra.mxu0 %vm391_vm0, %v6039_v56  ;;  %v670_v63 = vpop.f32.mrf.mxu0  ;;  %v4153_v0 = vpop.f32.mrf.mxu1  ;;  %v3736_v55 = vld [vmem:[%s6441_s3 + $0x660] sm:$0xff] }
 0x102   : > { %4611 = vmatprep.subr.mxu0 %v4868_v2  ;;  %4636 = vmatprep.subr.mxu1 %v4868_v2  ;;  %v676_v6 = vadd.f32 %v670_v63, %v5966_v30  ;;  %v3735_v63 = vld [vmem:[%s6441_s3 + $0x658] sm:$0xff] }
 0x103   : > { %4601 = vmatprep.mubr.msk.f32.mxu1 %vm4869_vm1, %v4868_v2  ;;  %4612 = vmatpush3.msra.mxu0 %v3698_v58  ;;  %v4131_v10 = vpop.f32.mrf.mxu0 }
 0x104   : > { %4637 = vmatpush3.msra.mxu1 %v3712_v60  ;;  %4613 = vmatprep.subr.mxu0 %v4868_v2  ;;  %v3734_v10 = vld [vmem:[%s6441_s3 + $0x650] sm:$0xff] }
 0x105   : > { %4602 = vmatmul.mubr.msk.f32.gmra.mxu1 %vm391_vm0, %v6058_v4  ;;  %4638 = vmatprep.subr.mxu1 %v4868_v2  ;;  %v778_v13 = vpop.f32.mrf.mxu1 }
 0x106   : > { %4579 = vmatprep.mubr.msk.f32.mxu0 %vm4869_vm1, %v4868_v2  ;;  %4614 = vmatpush3.msra.mxu0 %v3697_v9  ;;  %v6081_v15 = vadd.f32 %v778_v13, %v676_v6  ;;  %v6206_v6 = vld [vmem:[%s5894_s12 + $0x51] sm:$0xf]  ;;  %v3733_v13 = vld [vmem:[%s6441_s3 + $0x648] sm:$0xff] }
 0x107   : > { %4639 = vmatpush3.msra.mxu1 %v3711_v11  ;;  %4580 = vmatmul.mubr.msk.f32.gmra.mxu0 %vm391_vm0, %v6071_v12  ;;  %v4156_v17 = vpop.f32.mrf.mxu1  ;;  %v3720_v9 = vld [vmem:[%s6441_s3 + $0x610] sm:$0xff]  ;;  %v3719_v11 = vld [vmem:[%s6441_s3 + $0x608] sm:$0xff] }
 0x108   : > { %4615 = vmatprep.subr.mxu0 %v4868_v2  ;;  %4640 = vmatprep.subr.mxu1 %v4868_v2 }
 0x109   : > { %4604 = vmatprep.mubr.msk.f32.mxu1 %vm4869_vm1, %v4868_v2  ;;  %4616 = vmatpush3.msra.mxu0 %v3696_v14 }
 0x10a   : > { %4641 = vmatpush3.msra.mxu1 %v3710_v16  ;;  %4617 = vmatprep.subr.mxu0 %v4868_v2  ;;  %v3718_v16 = vld [vmem:[%s6441_s3 + $0x600] sm:$0xff] }
 0x10b   : > { %4605 = vmatmul.mubr.msk.f32.gmra.mxu1 %vm391_vm0, %v6091_v18  ;;  %4642 = vmatprep.subr.mxu1 %v4868_v2 }
 0x10c   : > { %4618 = vmatpush3.msra.mxu0 %v3695_v19  ;;  %4643 = vmatpush3.msra.mxu1 %v3709_v20  ;;  %v876_v23 = vpop.f32.mrf.mxu0  ;;  %v983_v24 = vpop.f32.mrf.mxu1  ;;  %v3732_v19 = vld [vmem:[%s6441_s3 + $0x640] sm:$0xff] }
 0x10d   : > { %4619 = vmatprep.subr.mxu0 %v4868_v2  ;;  %4644 = vmatprep.subr.mxu1 %v4868_v2  ;;  %v890_v27 = vadd.f32 %v876_v23, %v6013_v48  ;;  %v3737_v48 = vld [vmem:[%s6441_s3 + $0x668] sm:$0xff] }
 0x10e   : > { %4620 = vmatpush3.msra.mxu0 %v3694_v21  ;;  %4645 = vmatpush3.msra.mxu1 %v3708_v22  ;;  %v4175_v29 = vpop.f32.mrf.mxu0  ;;  %v4200_v30 = vpop.f32.mrf.mxu1  ;;  %v6238_v22 = vld [vmem:[%s5894_s12 + $0x5] sm:$0xff] }
 0x10f   : > { %4621 = vmatprep.subr.mxu0 %v4868_v2  ;;  %4646 = vmatprep.subr.mxu1 %v4868_v2  ;;  %v6128_v33 = vadd.f32 %v983_v24, %v890_v27  ;;  %v6241_v23 = vld [vmem:[%s5894_s12 + $0x25] sm:$0xff]  ;;  %v3749_v29 = vld [vmem:[%s6441_s3 + $0x6b0] sm:$0xff] }
 0x110   : > { %4622 = vmatpush3.msra.mxu0 %v3693_v25  ;;  %4623 = vmatprep.mubr.msk.f32.mxu0 %vm4869_vm1, %v4868_v2  ;;  %v3750_v25 = vld [vmem:[%s6441_s3 + $0x6b8] sm:$0xff] }
 0x111   : > { %4647 = vmatpush3.msra.mxu1 %v3707_v28  ;;  %4648 = vmatprep.mubr.msk.f32.mxu1 %vm4869_vm1, %v4868_v2  ;;  %v881_v37 = vpop.f32.mrf.mxu0 }
 0x112   : > { %4624 = vmatmul.mubr.msk.f32.vlgmr.msra.gmra.mxu0 %vm391_vm0, %v6123_v31  ;;  %4649 = vmatmul.mubr.msk.f32.vlgmr.msra.gmra.mxu1 %vm391_vm0, %v6126_v32  ;;  %v891_v38 = vadd.f32 %v881_v37, %v6048_v59  ;;  %v3721_v59 = vld [vmem:[%s6441_s3 + $0x618] sm:$0xff] }
 0x113   : > { %4657 = vmatprep.subr.mxu0 %v4868_v2  ;;  %4682 = vmatprep.subr.mxu1 %v4868_v2  ;;  %v4178_v40 = vpop.f32.mrf.mxu0 }
 0x114   : > { %4658 = vmatpush3.msra.mxu0 %v3725_v35  ;;  %4683 = vmatpush3.msra.mxu1 %v3739_v36  ;;  %v3748_v36 = vld [vmem:[%s6441_s3 + $0x6a8] sm:$0xff] }
 0x115   : > { %4659 = vmatprep.subr.mxu0 %v4868_v2  ;;  %4684 = vmatprep.subr.mxu1 %v4868_v2  ;;  %v988_v43 = vpop.f32.mrf.mxu1  ;;  %v6277_v40 = vld [vmem:[%s5894_s12 + $0x2d] sm:$0xff] }
 0x116   : > { %4626 = vmatprep.mubr.msk.f32.mxu0 %vm4869_vm1, %v4868_v2  ;;  %4660 = vmatpush3.msra.mxu0 %v3724_v39  ;;  %v6163_v45 = vadd.f32 %v988_v43, %v891_v38  ;;  %v3747_v43 = vld [vmem:[%s6441_s3 + $0x6a0] sm:$0xff] }
 0x117   : > { %4685 = vmatpush3.msra.mxu1 %v3738_v41  ;;  %4627 = vmatmul.mubr.msk.f32.gmra.mxu0 %vm391_vm0, %v6154_v42  ;;  %v886_v49 = vpop.f32.mrf.mxu0  ;;  %v4203_v50 = vpop.f32.mrf.mxu1 }
 0x118   : > { %4661 = vmatprep.subr.mxu0 %v4868_v2  ;;  %4686 = vmatprep.subr.mxu1 %v4868_v2  ;;  %v892_v52 = vadd.f32 %v886_v49, %v6081_v15  ;;  %v3746_v49 = vld [vmem:[%s6441_s3 + $0x698] sm:$0xff] }
 0x119   : > { %4651 = vmatprep.mubr.msk.f32.mxu1 %vm4869_vm1, %v4868_v2  ;;  %4662 = vmatpush3.msra.mxu0 %v3723_v44  ;;  %v4181_v54 = vpop.f32.mrf.mxu0 }
 0x11a   : > { %4687 = vmatpush3.msra.mxu1 %v3737_v48  ;;  %4663 = vmatprep.subr.mxu0 %v4868_v2  ;;  %v3745_v54 = vld [vmem:[%s6441_s3 + $0x690] sm:$0xff] }
 0x11b   : > { %4652 = vmatmul.mubr.msk.f32.gmra.mxu1 %vm391_vm0, %v6173_v51  ;;  %4688 = vmatprep.subr.mxu1 %v4868_v2  ;;  %v993_v58 = vpop.f32.mrf.mxu1 }
 0x11c   : > { %4629 = vmatprep.mubr.msk.f32.mxu0 %vm4869_vm1, %v4868_v2  ;;  %4664 = vmatpush3.msra.mxu0 %v3722_v53  ;;  %v6196_v60 = vadd.f32 %v993_v58, %v892_v52  ;;  %v6302_v53 = vld [vmem:[%s5894_s12 + $0x35] sm:$0xf] }
 0x11d   : > { %4689 = vmatpush3.msra.mxu1 %v3736_v55  ;;  %4630 = vmatmul.mubr.msk.f32.gmra.mxu0 %vm391_vm0, %v6186_v57  ;;  %v4206_v0 = vpop.f32.mrf.mxu1  ;;  %v3744_v55 = vld [vmem:[%s6441_s3 + $0x688] sm:$0xff] }
 0x11e   : > { %4665 = vmatprep.subr.mxu0 %v4868_v2  ;;  %4690 = vmatprep.subr.mxu1 %v4868_v2 }
 0x11f   : > { %4654 = vmatprep.mubr.msk.f32.mxu1 %vm4869_vm1, %v4868_v2  ;;  %4666 = vmatpush3.msra.mxu0 %v3721_v59 }
 0x120   : > { %4691 = vmatpush3.msra.mxu1 %v3735_v63  ;;  %4667 = vmatprep.subr.mxu0 %v4868_v2 }
 0x121   : > { %4655 = vmatmul.mubr.msk.f32.gmra.mxu1 %vm391_vm0, %v6206_v6  ;;  %4692 = vmatprep.subr.mxu1 %v4868_v2 }
 0x122   : > { %4668 = vmatpush3.msra.mxu0 %v3720_v9  ;;  %4693 = vmatpush3.msra.mxu1 %v3734_v10  ;;  %v1090_v14 = vpop.f32.mrf.mxu0  ;;  %v1197_v15 = vpop.f32.mrf.mxu1  ;;  %v6325_v10 = vld [vmem:[%s5894_s12 + $0x6] sm:$0xff] }
 0x123   : > { %4669 = vmatprep.subr.mxu0 %v4868_v2  ;;  %4694 = vmatprep.subr.mxu1 %v4868_v2  ;;  %v1104_v17 = vadd.f32 %v1090_v14, %v6128_v33  ;;  %v6263_v33 = vld [vmem:[%s5894_s12 + $0xd] sm:$0xff] }
 0x124   : > { %4670 = vmatpush3.msra.mxu0 %v3719_v11  ;;  %4695 = vmatpush3.msra.mxu1 %v3733_v13  ;;  %v4225_v20 = vpop.f32.mrf.mxu0  ;;  %v4250_v21 = vpop.f32.mrf.mxu1  ;;  %v6328_v11 = vld [vmem:[%s5894_s12 + $0xe] sm:$0xff] }
 0x125   : > { %4671 = vmatprep.subr.mxu0 %v4868_v2  ;;  %4696 = vmatprep.subr.mxu1 %v4868_v2  ;;  %v6243_v24 = vadd.f32 %v1197_v15, %v1104_v17  ;;  %6446 = vst [vmem:[#allocation2_spill] sm:$0xff] %v6328_v11 }
 0x126   : > { %4672 = vmatpush3.msra.mxu0 %v3718_v16  ;;  %4673 = vmatprep.mubr.msk.f32.mxu0 %vm4869_vm1, %v4868_v2  ;;  %v6341_v16 = vld [vmem:[%s5894_s12 + $0x16] sm:$0xf] }
 0x127   : > { %4697 = vmatpush3.msra.mxu1 %v3732_v19  ;;  %4698 = vmatprep.mubr.msk.f32.mxu1 %vm4869_vm1, %v4868_v2  ;;  %v1095_v27 = vpop.f32.mrf.mxu0  ;;  %6447 = vst [vmem:[#allocation3_spill] sm:$0xff] %v6341_v16 }
 0x128   : > { %4674 = vmatmul.mubr.msk.f32.vlgmr.msra.gmra.mxu0 %vm391_vm0, %v6238_v22  ;;  %4699 = vmatmul.mubr.msk.f32.vlgmr.msra.gmra.mxu1 %vm391_vm0, %v6241_v23  ;;  %v1105_v28 = vadd.f32 %v1095_v27, %v6163_v45  ;;  %v6287_v45 = vld [vmem:[%s5894_s12 + $0x15] sm:$0xf] }
 0x129   : > { %4707 = vmatprep.subr.mxu0 %v4868_v2  ;;  %4732 = vmatprep.subr.mxu1 %v4868_v2  ;;  %v4228_v30 = vpop.f32.mrf.mxu0 }
 0x12a   : > { %4708 = vmatpush3.msra.mxu0 %v3750_v25  ;;  %4740 = vmatpush3.msra.mxu1 %v3750_v25 }
 0x12b   : > { %4709 = vmatprep.subr.mxu0 %v4868_v2  ;;  %4733 = vmatprep.subr.mxu1 %v4868_v2  ;;  %v1202_v35 = vpop.f32.mrf.mxu1 }
 0x12c   : > { %4676 = vmatprep.mubr.msk.f32.mxu0 %vm4869_vm1, %v4868_v2  ;;  %4710 = vmatpush3.msra.mxu0 %v3749_v29  ;;  %v1212_v37 = vadd.f32 %v1202_v35, %v1105_v28 }
 0x12d   : > { %4741 = vmatpush3.msra.mxu1 %v3749_v29  ;;  %4677 = vmatmul.mubr.msk.f32.gmra.mxu0 %vm391_vm0, %v6263_v33  ;;  %v1100_v38 = vpop.f32.mrf.mxu0  ;;  %v4253_v39 = vpop.f32.mrf.mxu1 }
 0x12e   : > { %4711 = vmatprep.subr.mxu0 %v4868_v2  ;;  %4734 = vmatprep.subr.mxu1 %v4868_v2  ;;  %v1106_v41 = vadd.f32 %v1100_v38, %v6196_v60  ;;  %v3743_v60 = vld [vmem:[%s6441_s3 + $0x680] sm:$0xff] }
 0x12f   : > { %4701 = vmatprep.mubr.msk.f32.mxu1 %vm4869_vm1, %v4868_v2  ;;  %4712 = vmatpush3.msra.mxu0 %v3748_v36  ;;  %v4231_v44 = vpop.f32.mrf.mxu0 }
 0x130   : > { %4742 = vmatpush3.msra.mxu1 %v3748_v36  ;;  %4713 = vmatprep.subr.mxu0 %v4868_v2 }
 0x131   : > { %4702 = vmatmul.mubr.msk.f32.gmra.mxu1 %vm391_vm0, %v6277_v40  ;;  %4735 = vmatprep.subr.mxu1 %v4868_v2  ;;  %v1207_v48 = vpop.f32.mrf.mxu1 }
 0x132   : > { %4679 = vmatprep.mubr.msk.f32.mxu0 %vm4869_vm1, %v4868_v2  ;;  %4714 = vmatpush3.msra.mxu0 %v3747_v43  ;;  %v1213_v50 = vadd.f32 %v1207_v48, %v1106_v41 }
 0x133   : > { %4743 = vmatpush3.msra.mxu1 %v3747_v43  ;;  %4680 = vmatmul.mubr.msk.f32.gmra.mxu0 %vm391_vm0, %v6287_v45  ;;  %v4256_v52 = vpop.f32.mrf.mxu1 }
 0x134   : > { %4715 = vmatprep.subr.mxu0 %v4868_v2  ;;  %4736 = vmatprep.subr.mxu1 %v4868_v2 }
 0x135   : > { %4704 = vmatprep.mubr.msk.f32.mxu1 %vm4869_vm1, %v4868_v2  ;;  %4716 = vmatpush3.msra.mxu0 %v3746_v49 }
 0x136   : > { %4744 = vmatpush3.msra.mxu1 %v3746_v49  ;;  %4717 = vmatprep.subr.mxu0 %v4868_v2 }
 0x137   : > { %4705 = vmatmul.mubr.msk.f32.gmra.mxu1 %vm391_vm0, %v6302_v53  ;;  %4737 = vmatprep.subr.mxu1 %v4868_v2 }
 0x138   : > { %4718 = vmatpush3.msra.mxu0 %v3745_v54  ;;  %4745 = vmatpush3.msra.mxu1 %v3745_v54  ;;  %v1304_v58 = vpop.f32.mrf.mxu0  ;;  %v1411_v59 = vpop.f32.mrf.mxu1 }
 0x139   : > { %4719 = vmatprep.subr.mxu0 %v4868_v2  ;;  %4738 = vmatprep.subr.mxu1 %v4868_v2  ;;  %v1318_v63 = vadd.f32 %v1304_v58, %v6243_v24 }
 0x13a   : > { %4720 = vmatpush3.msra.mxu0 %v3744_v55  ;;  %4746 = vmatpush3.msra.mxu1 %v3744_v55  ;;  %v4275_v0 = vpop.f32.mrf.mxu0  ;;  %v4300_v9 = vpop.f32.mrf.mxu1 }
 0x13b   : > { %4721 = vmatprep.subr.mxu0 %v4868_v2  ;;  %4739 = vmatprep.subr.mxu1 %v4868_v2  ;;  %v1425_v13 = vadd.f32 %v1411_v59, %v1318_v63 }
 0x13c   : > { %4722 = vmatpush3.msra.mxu0 %v3743_v60  ;;  %4747 = vmatpush3.msra.mxu1 %v3743_v60 }
 0x13d   : > { %4723 = vmatprep.mubr.msk.f32.mxu0 %vm4869_vm1, %v4868_v2  ;;  %4726 = vmatprep.mubr.msk.f32.mxu1 %vm4869_vm1, %v4868_v2  ;;  %v1309_v14 = vpop.f32.mrf.mxu0 }
 0x13e   : > { %4724 = vmatmul.mubr.msk.f32.vlgmr.msra.gmra.mxu0 %vm391_vm0, %v6325_v10  ;;  %4727 = vmatmul.mubr.msk.f32.vlgmr.msra.gmra.mxu1 %vm391_vm0, %v6328_v11  ;;  %v1319_v15 = vadd.f32 %v1309_v14, %v1212_v37 }
 0x13f   : > { %4729 = vmatprep.mubr.msk.f32.mxu1 %vm4869_vm1, %v4868_v2  ;;  %v4278_v17 = vpop.f32.mrf.mxu0 }
 0x141   : > { %v1416_v19 = vpop.f32.mrf.mxu1 }
 0x142   : > { %4730 = vmatmul.mubr.msk.f32.gmra.mxu1 %vm391_vm0, %v6341_v16  ;;  %v1426_v20 = vadd.f32 %v1416_v19, %v1319_v15 }
 0x143   : > { %v1314_v21 = vpop.f32.mrf.mxu0  ;;  %v4303_v24 = vpop.f32.mrf.mxu1 }
 0x144   : > { %v1320_v25 = vadd.f32 %v1314_v21, %v1213_v50 }
 0x145   : > { %v4281_v27 = vpop.f32.mrf.mxu0 }
 0x147   : > { %v1421_v28 = vpop.f32.mrf.mxu1 }
 0x148   : > { %v1427_v29 = vadd.f32 %v1421_v28, %v1320_v25 }
 0x149   : > { %v4306_v30 = vpop.f32.mrf.mxu1 }
 0x14e   : > { %v1519_v35 = vpop.f32.mrf.mxu0  ;;  %v1626_v36 = vpop.f32.mrf.mxu1 }
 0x14f   : > { %v1533_v37 = vadd.f32 %v1519_v35, %v1425_v13 }
 0x150   : > { %v4325_v38 = vpop.f32.mrf.mxu0  ;;  %v4350_v2 = vpop.f32.mrf.mxu1 }
 0x151   : > { %v1640_v39 = vadd.f32 %v1626_v36, %v1533_v37 }
 0x153   : > { %v1524_v41 = vpop.f32.mrf.mxu0 }
 0x154   : > { %v1534_v43 = vadd.f32 %v1524_v41, %v1426_v20 }
 0x155   : > { %v4328_v44 = vpop.f32.mrf.mxu0 }
 0x157   : > { %v1631_v48 = vpop.f32.mrf.mxu1 }
 0x158   : > { %v1641_v49 = vadd.f32 %v1631_v48, %v1534_v43 }
 0x159   : > { %v1529_v52 = vpop.f32.mrf.mxu0  ;;  %v4353_v54 = vpop.f32.mrf.mxu1 }
 0x15a   : > { %v1535_v55 = vadd.f32 %v1529_v52, %v1427_v29 }
 0x15b   : > { %v4331_v58 = vpop.f32.mrf.mxu0 }
 0x15d   : > { %v1636_v50 = vpop.f32.mrf.mxu1 }
 0x15e   : > { %v1642_v59 = vadd.f32 %v1636_v50, %v1535_v55 }
 0x15f   : > { %v4356_v60 = vpop.f32.mrf.mxu1 }
 0x164   : > { %v1734_v63 = vpop.f32.mrf.mxu0  ;;  %v1842_v0 = vpop.f32.mrf.mxu1 }
 0x165   : > { %v1748_v9 = vadd.f32 %v1734_v63, %v1640_v39 }
 0x166   : > { %v4375_v14 = vpop.f32.mrf.mxu0  ;;  %v4400_v13 = vpop.f32.mrf.mxu1 }
 0x167   : > { %v1856_v15 = vadd.f32 %v1842_v0, %v1748_v9 }
 0x169   : > { %v1739_v17 = vpop.f32.mrf.mxu0 }
 0x16a   : > { %v1749_v19 = vadd.f32 %v1739_v17, %v1641_v49 }
 0x16b   : > { %v4378_v21 = vpop.f32.mrf.mxu0 }
 0x16d   : > { %v1847_v20 = vpop.f32.mrf.mxu1 }
 0x16e   : > { %v1857_v24 = vadd.f32 %v1847_v20, %v1749_v19 }
 0x16f   : > { %v1744_v25 = vpop.f32.mrf.mxu0  ;;  %v4403_v27 = vpop.f32.mrf.mxu1 }
 0x170   : > { %v1750_v28 = vadd.f32 %v1744_v25, %v1642_v59 }
 0x171   : > { %v4381_v30 = vpop.f32.mrf.mxu0 }
 0x173   : > { %v1852_v29 = vpop.f32.mrf.mxu1 }
 0x174   : > { %v1858_v35 = vadd.f32 %v1852_v29, %v1750_v28 }
 0x175   : > { %v4406_v36 = vpop.f32.mrf.mxu1 }
 0x17a   : > { %v1949_v37 = vpop.f32.mrf.mxu0  ;;  %v2056_v38 = vpop.f32.mrf.mxu1 }
 0x17b   : > { %v1963_v2 = vadd.f32 %v1949_v37, %v1856_v15 }
 0x17c   : > { %v4425_v41 = vpop.f32.mrf.mxu0  ;;  %v4450_v39 = vpop.f32.mrf.mxu1 }
 0x17d   : > { %v2070_v43 = vadd.f32 %v2056_v38, %v1963_v2 }
 0x17f   : > { %v1954_v44 = vpop.f32.mrf.mxu0 }
 0x180   : > { %v1964_v48 = vadd.f32 %v1954_v44, %v1857_v24 }
 0x181   : > { %v4428_v52 = vpop.f32.mrf.mxu0 }
 0x183   : > { %v2061_v49 = vpop.f32.mrf.mxu1 }
 0x184   : > { %v2071_v54 = vadd.f32 %v2061_v49, %v1964_v48 }
 0x185   : > { %v1959_v55 = vpop.f32.mrf.mxu0  ;;  %v4453_v58 = vpop.f32.mrf.mxu1 }
 0x186   : > { %v1965_v50 = vadd.f32 %v1959_v55, %v1858_v35 }
 0x187   : > { %v4431_v60 = vpop.f32.mrf.mxu0 }
 0x189   : > { %v2066_v59 = vpop.f32.mrf.mxu1 }
 0x18a   : > { %v2072_v63 = vadd.f32 %v2066_v59, %v1965_v50 }
 0x18b   : > { %v4456_v0 = vpop.f32.mrf.mxu1 }
 0x190   : > { %v2163_v9 = vpop.f32.mrf.mxu0  ;;  %v2270_v14 = vpop.f32.mrf.mxu1 }
 0x191   : > { %v2177_v13 = vadd.f32 %v2163_v9, %v2070_v43 }
 0x192   : > { %v4475_v17 = vpop.f32.mrf.mxu0  ;;  %v4500_v15 = vpop.f32.mrf.mxu1 }
 0x193   : > { %v2284_v19 = vadd.f32 %v2270_v14, %v2177_v13 }
 0x195   : > { %v2168_v21 = vpop.f32.mrf.mxu0 }
 0x196   : > { %v2178_v20 = vadd.f32 %v2168_v21, %v2071_v54 }
 0x197   : > { %v4478_v25 = vpop.f32.mrf.mxu0 }
 0x199   : > { %v2275_v24 = vpop.f32.mrf.mxu1 }
 0x19a   : > { %v2285_v27 = vadd.f32 %v2275_v24, %v2178_v20 }
 0x19b   : > { %v2173_v28 = vpop.f32.mrf.mxu0  ;;  %v4503_v30 = vpop.f32.mrf.mxu1 }
 0x19c   : > { %v2179_v29 = vadd.f32 %v2173_v28, %v2072_v63 }
 0x19d   : > { %v4481_v36 = vpop.f32.mrf.mxu0 }
 0x19f   : > { %v2280_v35 = vpop.f32.mrf.mxu1 }
 0x1a0   : > { %v2286_v37 = vadd.f32 %v2280_v35, %v2179_v29 }
 0x1a1   : > { %v4506_v38 = vpop.f32.mrf.mxu1 }
 0x1a6   : > { %v2377_v2 = vpop.f32.mrf.mxu0  ;;  %v2485_v41 = vpop.f32.mrf.mxu1 }
 0x1a7   : > { %v2391_v39 = vadd.f32 %v2377_v2, %v2284_v19 }
 0x1a8   : > { %v4525_v44 = vpop.f32.mrf.mxu0  ;;  %v4550_v43 = vpop.f32.mrf.mxu1 }
 0x1a9   : > { %v2499_v48 = vadd.f32 %v2485_v41, %v2391_v39 }
 0x1ab   : > { %v2382_v52 = vpop.f32.mrf.mxu0 }
 0x1ac   : > { %v2392_v49 = vadd.f32 %v2382_v52, %v2285_v27 }
 0x1ad   : > { %v4528_v55 = vpop.f32.mrf.mxu0 }
 0x1af   : > { %v2490_v54 = vpop.f32.mrf.mxu1 }
 0x1b0   : > { %v2500_v58 = vadd.f32 %v2490_v54, %v2392_v49 }
 0x1b1   : > { %v2387_v50 = vpop.f32.mrf.mxu0  ;;  %v4553_v60 = vpop.f32.mrf.mxu1 }
 0x1b2   : > { %v2393_v59 = vadd.f32 %v2387_v50, %v2286_v37 }
 0x1b3   : > { %v4531_v0 = vpop.f32.mrf.mxu0 }
 0x1b5   : > { %v2495_v63 = vpop.f32.mrf.mxu1 }
 0x1b7   : > { %v4556_v9 = vpop.f32.mrf.mxu1 }
 0x1bc   : > { %v2592_v14 = vpop.f32.mrf.mxu0  ;;  %v2700_v13 = vpop.f32.mrf.mxu1 }
 0x1bd   : > { %v2606_v0 = vadd.f32 %v2592_v14, %v2499_v48 }
 0x1be   : > { %v4575_v17 = vpop.f32.mrf.mxu0  ;;  %v4600_v15 = vpop.f32.mrf.mxu1 }
 0x1bf   : > { %v2501_v15 = vadd.f32 %v2495_v63, %v2393_v59 }
 0x1c1   : > { %v2597_v21 = vpop.f32.mrf.mxu0 }
 0x1c2   : > { %v2607_v9 = vadd.f32 %v2597_v21, %v2500_v58 }
 0x1c3   : > { %v4578_v19 = vpop.f32.mrf.mxu0 }
 0x1c5   : > { %v2705_v20 = vpop.f32.mrf.mxu1 }
 0x1c7   : > { %v2602_v25 = vpop.f32.mrf.mxu0  ;;  %v4603_v24 = vpop.f32.mrf.mxu1 }
 0x1c8   : > { %v2714_v24 = vadd.f32 %v2700_v13, %v2606_v0 }
 0x1c9   : > { %v4581_v28 = vpop.f32.mrf.mxu0 }
 0x1ca   : > { %v2715_v28 = vadd.f32 %v2705_v20, %v2607_v9  ;;  %v4793_v9 = vld [vmem:[%s4988_s14 + $0x35] sm:$0xf] }
 0x1cb   : > { %v2710_v27 = vpop.f32.mrf.mxu1 }
 0x1cd   : > { %v4606_v30 = vpop.f32.mrf.mxu1 }
 0x1ce   : > { %v2608_v30 = vadd.f32 %v2602_v25, %v2501_v15  ;;  %v3754_v25 = vld [vmem:[%s6442_s4] ss:$0 sm:$0xff]  ;;  %v4794_v15 = vld [vmem:[%s4988_s14 + $0x6] sm:$0xff] }
 0x1d2   : > { %v2808_v29 = vpop.f32.mrf.mxu0  ;;  %v2915_v36 = vpop.f32.mrf.mxu1 }
 0x1d4   : > { %v4625_v35 = vpop.f32.mrf.mxu0  ;;  %v4650_v38 = vpop.f32.mrf.mxu1 }
 0x1d5   : > { %v2822_v38 = vadd.f32 %v2808_v29, %v2714_v24 }
 0x1d7   : > { %v2813_v37 = vpop.f32.mrf.mxu0 }
 0x1d9   : > { %v4628_v2 = vpop.f32.mrf.mxu0 }
 0x1da   : > { %v2823_v2 = vadd.f32 %v2813_v37, %v2715_v28  ;;  %v4795_v28 = vld [vmem:[%s5448_s30] sm:$0xff] }
 0x1db   : > { %v2920_v41 = vpop.f32.mrf.mxu1 }
 0x1dc   : > { %v2930_v11 = vadd.f32 %v2920_v41, %v2823_v2 }
 0x1dd   : > { %v2818_v39 = vpop.f32.mrf.mxu0  ;;  %v4653_v44 = vpop.f32.mrf.mxu1 }
 0x1df   : > { %v4631_v43 = vpop.f32.mrf.mxu0 }
 0x1e0   : > { %v2716_v43 = vadd.f32 %v2710_v27, %v2608_v30 }
 0x1e1   : > { %v2925_v52 = vpop.f32.mrf.mxu1 }
 0x1e2   : > { %v2824_v16 = vadd.f32 %v2818_v39, %v2716_v43 }
 0x1e3   : > { %v4656_v49 = vpop.f32.mrf.mxu1 }
 0x1e4   : > { %v2929_v49 = vadd.f32 %v2915_v36, %v2822_v38  ;;  %v2931_v14 = vadd.f32 %v2925_v52, %v2824_v16  ;;  %v6449_v38 = vmax.f32 %v5148_v3, %v5158_v5  ;;  %v4803_v5 = vld [vmem:[%s5448_s30 + $0x30] sm:$0xf] }
 0x1e8   : > { %v3022_v55 = vpop.f32.mrf.mxu0  ;;  %v3129_v54 = vpop.f32.mrf.mxu1 }
 0x1ea   : > { %v4675_v50 = vpop.f32.mrf.mxu0  ;;  %v4700_v60 = vpop.f32.mrf.mxu1 }
 0x1eb   : > { %v3036_v60 = vadd.f32 %v3022_v55, %v2929_v49  ;;  %v4798_v49 = vld [vmem:[%s5448_s30 + $0x8] sm:$0xff] }
 0x1ed   : > { %v3027_v17 = vpop.f32.mrf.mxu0  ;;  %v3143_v59 = vadd.f32 %v3129_v54, %v3036_v60 }
 0x1ee   : > { %v3037_v48 = vadd.f32 %v3027_v17, %v2930_v11  ;;  %v1112_v17 = vmax.f32 %v5168_v8, %v4793_v9 }
 0x1ef   : > { %v4678_v19 = vpop.f32.mrf.mxu0 }
 0x1f0   : > { %v6448_v19 = vmax.f32 %v5132_v61, %v5137_v62  ;;  %v4800_v62 = vld [vmem:[%s5448_s30 + $0x20] sm:$0xff] }
 0x1f1   : > { %v3134_v35 = vpop.f32.mrf.mxu1 }
 0x1f2   : > { %v3144_v63 = vadd.f32 %v3134_v35, %v3037_v48  ;;  %v1217_v24 = vmax.f32 %v6448_v19, %v4794_v15  ;;  %v4796_v35 = vld [vmem:[%s4988_s14 + $0xe] sm:$0xff]  ;;  %v4801_v48 = vld [vmem:[%s5448_s30 + $0x1] sm:$0xff] }
 0x1f3   : > { %v3032_v7 = vpop.f32.mrf.mxu0  ;;  %v4703_v44 = vpop.f32.mrf.mxu1  ;;  %v1218_v2 = vmax.f32 %v6449_v38, %v4796_v35  ;;  %v4815_v19 = vld [vmem:[%s5448_s30 + $0x51] sm:$0xf]  ;;  %v4817_v35 = vld [vmem:[%s5448_s30 + $0x15] sm:$0xf] }
 0x1f4   : > { %v3038_v13 = vadd.f32 %v3032_v7, %v2931_v14  ;;  %v1324_v30 = vmax.f32 %v1217_v24, %v4795_v28  ;;  %v4797_v44 = vld [vmem:[%s4988_s14 + $0x16] sm:$0xf]  ;;  %v4802_v14 = vld [vmem:[%s5448_s30 + $0x28] sm:$0xff]  ;;  %s4749_s14 = smul.u32 24, %s6467_s19 }
 0x1f5   : > { %v4681_v1 = vpop.f32.mrf.mxu0  ;;  %v1219_v43 = vmax.f32 %v1112_v17, %v4797_v44  ;;  %v1325_v8 = vmax.f32 %v1218_v2, %v4798_v49  ;;  %v4814_v17 = vld [vmem:[%s5448_s30 + $0x49] sm:$0xff] }
 0x1f6   : > { %v1432_v60 = vmax.f32 %v1324_v30, %v4800_v62  ;;  %v4816_v28 = vld [vmem:[%s5448_s30 + $0xd] sm:$0xff]  ;;  %v4818_v2 = vld [vmem:[%s5448_s30 + $0x25] sm:$0xff] }
 0x1f7   : > { %v3139_v50 = vpop.f32.mrf.mxu1  ;;  %v1433_v3 = vmax.f32 %v1325_v8, %v4802_v14  ;;  %v4820_v8 = vld [vmem:[%s5448_s30 + $0x2d] sm:$0xff] }
 0x1f8   : > { %v3145_v37 = vadd.f32 %v3139_v50, %v3038_v13  ;;  %v4799_v50 = vld [vmem:[%s5448_s30 + $0x10] sm:$0xf] }
 0x1f9   : > { %v4706_v58 = vpop.f32.mrf.mxu1  ;;  %v1326_v61 = vmax.f32 %v1219_v43, %v4799_v50  ;;  %v4819_v43 = vld [vmem:[%s5448_s30 + $0x6] sm:$0xff] }
 0x1fa   : > { %v1539_v58 = vmax.f32 %v1432_v60, %v4801_v48  ;;  %v4822_v60 = vld [vmem:[%s5448_s30 + $0xe] sm:$0xff] }
 0x1fe   : > { %v3236_v21 = vpop.f32.mrf.mxu0  ;;  %v3241_v20 = vpop.f32.mrf.mxu1 }
 0x1ff   : > { %v3250_v29 = vadd.f32 %v3236_v21, %v3143_v59  ;;  %v3251_v27 = vadd.f32 %v3241_v20, %v3144_v63  ;;  %v1434_v59 = vmax.f32 %v1326_v61, %v4803_v5  ;;  %v4804_v63 = vld [vmem:[%s5448_s30 + $0x9] sm:$0xff]  ;;  %v4805_v21 = vld [vmem:[%s5448_s30 + $0x11] sm:$0xf]  ;;  %v4821_v61 = vld [vmem:[%s5448_s30 + $0x35] sm:$0xf] }
 0x200   : > { %v4725_v1 = vpop.f32.mrf.mxu0  ;;  %v4728_v36 = vpop.f32.mrf.mxu1  ;;  %v1540_v13 = vmax.f32 %v1433_v3, %v4804_v63  ;;  %v4824_v3 = vld [vmem:[%s5894_s12] sm:$0xff] }
 0x201   : > { %v3260_v41 = vadd.f32 %v3754_v25, %v3250_v29  ;;  %v3261_v16 = vadd.f32 %v3754_v25, %v3251_v27  ;;  %v1541_v20 = vmax.f32 %v1434_v59, %v4805_v21  ;;  %v4807_v27 = vld [vmem:[%s5448_s30 + $0x60] sm:$0xff]  ;;  %v4808_v36 = vld [vmem:[%s5448_s30 + $0x48] sm:$0xff] }
 0x202   : > { %v3246_v11 = vpop.f32.mrf.mxu1  ;;  %v4825_v59 = vld [vmem:[%s5894_s12 + $0x20] sm:$0xff] }
 0x203   : > { %v3252_v39 = vadd.f32 %v3246_v11, %v3145_v37  ;;  %v3263_v7 = vmax.f32 %v3260_v41, 0.0  ;;  %v3264_v54 = vmax.f32 %v3261_v16, 0.0  ;;  %v1648_v37 = vmax.f32 %v1540_v13, %v4808_v36  ;;  %v4809_v41 = vld [vmem:[%s5448_s30 + $0x50] sm:$0xf]  ;;  %v4810_v16 = vld [vmem:[%s5448_s30 + $0x68] sm:$0xff] }
 0x204   : > { %v4731_v52 = vpop.f32.mrf.mxu1  ;;  %v1649_v11 = vmax.f32 %v1541_v20, %v4809_v41  ;;  %v4826_v13 = vld [vmem:[%s5894_s12 + $0x8] sm:$0xff] }
 0x205   : > { %3269 = vrot.lane.b32.xlu0 %v3263_v7, %s4870_s27  ;;  %v3262_v55 = vadd.f32 %v3754_v25, %v3252_v39  ;;  %v4806_v25 = vld [vmem:[%s5448_s30 + $0x40] sm:$0xff]  ;;  %v1756_v39 = vmax.f32 %v1648_v37, %v4810_v16  ;;  %v4811_v7 = vld [vmem:[%s5448_s30 + $0x70] sm:$0xf] }
 0x206   : > { %v1647_v29 = vmax.f32 %v1539_v58, %v4806_v25  ;;  %v1757_v52 = vmax.f32 %v1649_v11, %v4811_v7  ;;  %v4823_v58 = vld [vmem:[%s5448_s30 + $0x16] sm:$0xf]  ;;  %v4827_v25 = vld [vmem:[%s5894_s12 + $0x28] sm:$0xff] }
 0x207   : > { %v3265_v0 = vmax.f32 %v3262_v55, 0.0  ;;  %v4812_v55 = vld [vmem:[%s5448_s30 + $0x41] sm:$0xff]  ;;  %v1863_v15 = vmax.f32 %v1756_v39, %v4814_v17 }
 0x208   : > { %v1755_v1 = vmax.f32 %v1647_v29, %v4807_v27  ;;  %v1864_v24 = vmax.f32 %v1757_v52, %v4815_v19 }
 0x209   : > { %3271 = vrot.lane.b32.xlu0 %v3264_v54, %s4870_s27  ;;  %3273 = vrot.lane.b32.xlu1 %v3265_v0, %s4870_s27  ;;  %v4813_v0 = vld [vmem:[%s5448_s30 + $0x5] sm:$0xff]  ;;  %v1970_v30 = vmax.f32 %v1863_v15, %v4816_v28  ;;  %s4748_s30 = smul.u32 6, %s6469_s18 }
 0x20a   : > { %v1862_v54 = vmax.f32 %v1755_v1, %v4812_v55  ;;  %v1971_v38 = vmax.f32 %v1864_v24, %v4817_v35 }
 0x20b   : > { %v2077_v50 = vmax.f32 %v1970_v30, %v4820_v8  ;;  %s361_s12 = sadd.s32 %s4749_s14, %s4748_s30 }
 0x20c   : > { %v1969_v9 = vmax.f32 %v1862_v54, %v4813_v0  ;;  %v2078_v62 = vmax.f32 %v1971_v38, %v4821_v61  ;;  %s3419_s28 = sshll.u32 %s361_s12, 3 }
 0x20d   : > { %v2184_v48 = vmax.f32 %v2077_v50, %v4822_v60  ;;  %s363_s29 = scalar_lea.vmem %s6443_s5, %s3419_s28 }
 0x20e   : > { %v2076_v44 = vmax.f32 %v1969_v9, %v4818_v2  ;;  %v2185_v14 = vmax.f32 %v2078_v62, %v4823_v58 }
 0x20f   : > { %v2291_v21 = vmax.f32 %v2184_v48, %v4826_v13 }
 0x210   : > { %v2183_v49 = vmax.f32 %v2076_v44, %v4819_v43  ;;  %v2292_v20 = vmax.f32 %v2185_v14, %v5957_v26 }
 0x211   : > { %v2399_v29 = vmax.f32 %v2291_v21, %v4827_v25 }
 0x212   : > { %v2290_v5 = vmax.f32 %v2183_v49, %v4824_v3  ;;  %v2400_v27 = vmax.f32 %v2292_v20, %v5976_v34 }
 0x213   : > { %v2506_v37 = vmax.f32 %v2399_v29, %v6039_v56 }
 0x214   : > { %v2398_v63 = vmax.f32 %v2290_v5, %v4825_v59  ;;  %v2507_v41 = vmax.f32 %v2400_v27, %v6071_v12 }
 0x215   : > { %v2614_v11 = vmax.f32 %v2506_v37, %v6058_v4 }
 0x216   : > { %v2505_v1 = vmax.f32 %v2398_v63, %v6008_v46  ;;  %v2615_v16 = vmax.f32 %v2507_v41, %v6091_v18 }
 0x217   : > { %v2722_v46 = vmax.f32 %v2614_v11, %v6154_v42 }
 0x218   : > { %v2613_v36 = vmax.f32 %v2505_v1, %v6011_v47  ;;  %v2723_v47 = vmax.f32 %v2615_v16, %v6186_v57 }
 0x219   : > { %v2829_v56 = vmax.f32 %v2722_v46, %v6173_v51 }
 0x21a   : > { %v2721_v26 = vmax.f32 %v2613_v36, %v6123_v31  ;;  %v2830_v12 = vmax.f32 %v2723_v47, %v6206_v6  ;;  %v6450_v6 = vld [vmem:[#allocation3_spill] sm:$0xff] }
 0x21b   : > { %v2936_v31 = vmax.f32 %v2829_v56, %v6263_v33  ;;  %v6451_v33 = vld [vmem:[#allocation2_spill] sm:$0xff] }
 0x21c   : > { %v2828_v34 = vmax.f32 %v2721_v26, %v6126_v32  ;;  %v2937_v39 = vmax.f32 %v2830_v12, %v6287_v45 }
 0x21d   : > { %v3043_v32 = vmax.f32 %v2936_v31, %v6277_v40 }
 0x21e   : > { %v2935_v4 = vmax.f32 %v2828_v34, %v6238_v22  ;;  %v3044_v42 = vmax.f32 %v2937_v39, %v6302_v53 }
 0x21f   : > { %v3150_v45 = vmax.f32 %v3043_v32, %v6451_v33 }
 0x220   : > { %v3042_v18 = vmax.f32 %v2935_v4, %v6241_v23  ;;  %v3151_v22 = vmax.f32 %v3044_v42, %v6450_v6 }
 0x222   : > { %v3149_v57 = vmax.f32 %v3042_v18, %v6325_v10 }
 0x277   : > { %v3270_v51 = vpop.permute.xlu0 %3269 }
 0x278   : > { %v3278_v23 = vsel %vm391_vm0, %v3149_v57, %v3270_v51  ;;  %3283 = vst.msk [vmem:[%s363_s29 + $0x8] sm:$0xff] %vm3282_vm2, %v3270_v51 }
 0x279   : > { %3281 = vst [vmem:[%s363_s29] sm:$0xff] %v3278_v23 }
 0x27b   : > { %v3272_v40 = vpop.permute.xlu0 %3271  ;;  %v3274_v7 = vpop.permute.xlu1 %3273 }
 0x27c   : > { %v3279_v53 = vsel %vm391_vm0, %v3150_v45, %v3272_v40  ;;  %3285 = vst.msk [vmem:[%s363_s29 + $0x18] sm:$0xff] %vm3282_vm2, %v3272_v40  ;;  %v3280_v10 = vsel %vm391_vm0, %v3151_v22, %v3274_v7 }
 0x27d   : > { %3288 = vst.msk [vmem:[%s363_s29 + $0x28] sm:$0xf] %vm3287_vm3, %v3274_v7  ;;  %3284 = vst [vmem:[%s363_s29 + $0x10] sm:$0xff] %v3279_v53 }
 0x27e   : > { %3286 = vst [vmem:[%s363_s29 + $0x20] sm:$0xf] %v3280_v10 }
 0x27f PF: > { %s15_s22 = sadd.s32 1, %s4866_s22   ;;  %s6452_s18 = smov %s4858_s20 }
 0x280   : > { %p12_p10 = scmp.ge.s32.totalorder %s15_s22, 10   ;;  %s6453_s19 = smov %s4862_s21 }
 0x281   : > { %s6454_s20 = smov %s6457_s23  ;;  %s6455_s21 = smov %s6461_s24 }
 0x282   :  { %14 = sbr.rel (!%p12_p10) target bundleno = 3 (0x3), region = 111 }

</bundles_post_ra>
